<compile_context>
chip_gen: v7x
topology: tpu7x:2x2x1
jax: 0.10.0
libtpu: 0.0.40
codegen_flags: <defaults>
</compile_context>

<pallas_src>
import functools

import jax
import jax.numpy as jnp
from jax.experimental import pallas as pl
from jax.experimental.pallas import tpu as pltpu

EPS = 1e-5
LANE = 128


def _round_up(x, m):
    return (x + m - 1) // m * m


def _tpu_vmem_capacity():
    try:
        return int(pltpu.get_tpu_info().vmem_capacity_bytes)
    except Exception:
        return 64 << 20          # conservative (v7x-sized) fallback


def _image_vmem_budget():
    # Budget for the per-batch resident input block (Pallas double-buffers it).
    return max(2 << 20, _tpu_vmem_capacity() // 24)


def _pick_row_tile(H, OW):
    Hr = _round_up(H, 8)
    # keep ~<=2048 output pixels per grid step so accumulators stay small
    th = max(8, min(32, ((2048 // max(OW, 16)) // 8) * 8))
    th = min(th, Hr)
    if Hr >= 16:                 # prefer >=2 row tiles per image (pipelining + v7x megacore)
        th = min(th, max(8, ((Hr // 2) // 8) * 8))
    return th


# ---------------------------------------------------------------------------
# Fused kernel: conv1 (1x1) -> conv2 (3x3 dilated OR 1x5+5x1) -> conv3 (1x1)
#               -> residual add -> final PReLU, for one (batch, row-tile) step.
# BN scale is pre-folded into the weights; only "+shift" remains in the epilogues.
# ---------------------------------------------------------------------------
def _regular_block_kernel(*refs, kernel_size, dilation, th, OW, halo, pw):
    if kernel_size == 3:
        (x_ref, m1_ref, w1_ref, b1_ref, w2_ref, b2_ref,
         w3_ref, b3_ref, al_ref, o_ref) = refs
    else:
        (x_ref, m1_ref, m2_ref, w1_ref, b1_ref, w2a_ref, b2a_ref,
         w2b_ref, b2b_ref, w3_ref, b3_ref, al_ref, o_ref) = refs

    nrows = th + 2 * halo
    Wpad = x_ref.shape[2]
    cp = x_ref.shape[3]
    wp = w1_ref.shape[1]
    coutp = o_ref.shape[3]

    i = pl.program_id(1)
    r0 = pl.multiple_of(i * th, 8)            # start row of this tile (block-local, padded coords)

    # ---- conv1: 1x1 (BN scale folded into w1) + shift + PReLU --------------------------------
    xr = x_ref[0, pl.ds(r0, nrows), :, :]                                    # (nrows, Wpad, cp) bf16
    a1 = xr.reshape(nrows * Wpad, cp)
    h1 = jnp.dot(a1, w1_ref[...], preferred_element_type=jnp.float32) + b1_ref[...]
    al1 = al_ref[0, 0]
    h1 = jnp.where(h1 > 0, h1, al1 * h1)

    # zero conv2's spatial zero-padding region (zeros of the *conv1 output*, not the raw input)
    m1 = m1_ref[pl.ds(pl.multiple_of(r0 * Wpad, 128), nrows * Wpad), :]       # (nrows*Wpad, 1) f32
    h1 = h1 * m1
    h1 = h1.astype(jnp.bfloat16).reshape(nrows, Wpad, wp)

    al2 = al_ref[0, 1]
    if kernel_size == 3:
        d = dilation
        acc2 = jnp.zeros((th * OW, wp), jnp.float32)
        for tj in range(3):
            # hoist the sublane-shifted column slab once per column tap, reuse for all row taps
            slab = h1[:, tj * d: tj * d + OW, :]                             # (nrows, OW, wp)
            for ti in range(3):
                win = slab[ti * d: ti * d + th]                              # cheap leading-dim slice
                acc2 = acc2 + jnp.dot(win.reshape(th * OW, wp), w2_ref[ti * 3 + tj],
                                      preferred_element_type=jnp.float32)
        h2 = acc2 + b2_ref[...]
        h2 = jnp.where(h2 > 0, h2, al2 * h2)
    else:
        # 1x5 conv + BN shift (no PReLU)
        acc2a = jnp.zeros((nrows * OW, wp), jnp.float32)
        for tj in range(5):
            slab = h1[:, tj: tj + OW, :]
            acc2a = acc2a + jnp.dot(slab.reshape(nrows * OW, wp), w2a_ref[tj],
                                    preferred_element_type=jnp.float32)
        h2a = acc2a + b2a_ref[...]
        # zero the 5x1 conv's row padding (zeros of the 1x5+BN output)
        m2 = m2_ref[pl.ds(pl.multiple_of(r0 * OW, 128), nrows * OW), :]
        h2a = (h2a * m2).astype(jnp.bfloat16).reshape(nrows, OW, wp)
        # 5x1 conv + BN shift, then the single PReLU of the asymmetric pair
        acc2b = jnp.zeros((th * OW, wp), jnp.float32)
        for ti in range(5):
            win = h2a[ti: ti + th]
            acc2b = acc2b + jnp.dot(win.reshape(th * OW, wp), w2b_ref[ti],
                                    preferred_element_type=jnp.float32)
        h2 = acc2b + b2b_ref[...]
        h2 = jnp.where(h2 > 0, h2, al2 * h2)
    h2 = h2.astype(jnp.bfloat16)

    # ---- conv3: 1x1 + BN shift (Dropout2d == identity in eval) -------------------------------
    y = jnp.dot(h2, w3_ref[...], preferred_element_type=jnp.float32) + b3_ref[...]

    # ---- residual add (pad_zeros == the already-zero padded lanes) + final PReLU -------------
    res = x_ref[0, pl.ds(r0 + halo, th), pw: pw + OW, :coutp]                # (th, OW, coutp) bf16
    y = y + res.reshape(th * OW, coutp).astype(jnp.float32)
    al3 = al_ref[0, 2]
    y = jnp.where(y > 0, y, al3 * y)
    o_ref[0] = y.reshape(th, OW, coutp).astype(o_ref.dtype)


def _run_chunk(x_chunk, m1, m2, params, *, kernel_size, dilation, th, OW, halo, pw, out_dtype):
    B, Hblk, Wpad, cp = x_chunk.shape
    n_rt = (Hblk - 2 * halo) // th
    coutp = params['w3'].shape[1]

    kern = functools.partial(_regular_block_kernel, kernel_size=kernel_size,
                             dilation=dilation, th=th, OW=OW, halo=halo, pw=pw)

    def const2(shape):
        return pl.BlockSpec(shape, lambda b, i: (0, 0))

    def const3(shape):
        return pl.BlockSpec(shape, lambda b, i: (0, 0, 0))

    x_spec = pl.BlockSpec((1, Hblk, Wpad, cp), lambda b, i: (b, 0, 0, 0))   # resident per batch
    smem = pl.BlockSpec(memory_space=pltpu.MemorySpace.SMEM)

    if kernel_size == 3:
        in_specs = [x_spec, const2(m1.shape),
                    const2(params['w1'].shape), const2(params['b1'].shape),
                    const3(params['w2'].shape), const2(params['b2'].shape),
                    const2(params['w3'].shape), const2(params['b3'].shape),
                    smem]
        args = (x_chunk, m1, params['w1'], params['b1'], params['w2'], params['b2'],
                params['w3'], params['b3'], params['alphas'])
    else:
        in_specs = [x_spec, const2(m1.shape), const2(m2.shape),
                    const2(params['w1'].shape), const2(params['b1'].shape),
                    const3(params['w2a'].shape), const2(params['b2a'].shape),
                    const3(params['w2b'].shape), const2(params['b2b'].shape),
                    const2(params['w3'].shape), const2(params['b3'].shape),
                    smem]
        args = (x_chunk, m1, m2, params['w1'], params['b1'],
                params['w2a'], params['b2a'], params['w2b'], params['b2b'],
                params['w3'], params['b3'], params['alphas'])

    return pl.pallas_call(
        kern,
        grid=(B, n_rt),
        in_specs=in_specs,
        out_specs=pl.BlockSpec((1, th, OW, coutp), lambda b, i: (b, i, 0, 0)),
        out_shape=jax.ShapeDtypeStruct((B, Hblk - 2 * halo, OW, coutp), out_dtype),
        compiler_params=pltpu.CompilerParams(
            dimension_semantics=("parallel", "parallel"),
            vmem_limit_bytes=int(min(64 << 20, _tpu_vmem_capacity() // 2)),
        ),
    )(*args)


# ---------------------------------------------------------------------------
# Parameters (deterministic, PyTorch-like init) with BN scale folded into the
# weights (f32 fold before the bf16 cast) and persistent 128-lane padding.
# ---------------------------------------------------------------------------
def _bn_stats(key, c):
    k1, k2, k3, k4 = jax.random.split(key, 4)
    gamma = jax.random.uniform(k1, (c,), jnp.float32, 0.5, 1.5)
    beta = jax.random.normal(k2, (c,), jnp.float32) * 0.1
    mean = jax.random.normal(k3, (c,), jnp.float32) * 0.1
    var = jax.random.uniform(k4, (c,), jnp.float32, 0.5, 1.5)
    scale = gamma / jnp.sqrt(var + EPS)
    shift = beta - mean * scale
    return scale, shift


def _folded_conv(key, kh, kw, cin, cout, cinp, coutp, scale, shift):
    fan_in = cin * kh * kw
    w = jax.random.normal(key, (kh, kw, cin, cout), jnp.float32) / jnp.sqrt(fan_in)
    w = w * scale[None, None, None, :]                      # fold BN scale in f32
    w = jnp.pad(w, ((0, 0), (0, 0), (0, cinp - cin), (0, coutp - cout)))
    w = w.reshape(kh * kw, cinp, coutp).astype(jnp.bfloat16)
    b = jnp.pad(shift, (0, coutp - cout)).reshape(1, coutp).astype(jnp.float32)
    return w, b


def make_regular_block_params(key, in_channels, out_channels, kernel_size=3,
                              projection_ratio=4):
    width = in_channels // projection_ratio
    cinp = _round_up(in_channels, LANE)
    coutp = _round_up(out_channels, LANE)
    cp = max(cinp, coutp)                 # the activation is lane-padded once to this width
    wp = _round_up(width, LANE)
    keys = jax.random.split(key, 8)

    s1, t1 = _bn_stats(keys[0], width)
    w1, b1 = _folded_conv(keys[1], 1, 1, in_channels, width, cp, wp, s1, t1)
    s3, t3 = _bn_stats(keys[2], out_channels)
    w3, b3 = _folded_conv(keys[3], 1, 1, width, out_channels, wp, coutp, s3, t3)
    params = {'w1': w1[0], 'b1': b1, 'w3': w3[0], 'b3': b3,
              'alphas': jnp.full((1, 3), 0.25, jnp.float32)}      # nn.PReLU() default init
    if kernel_size == 3:
        s2, t2 = _bn_stats(keys[4], width)
        w2, b2 = _folded_conv(keys[5], 3, 3, width, width, wp, wp, s2, t2)
        params.update(w2=w2, b2=b2)
    elif kernel_size == 5:
        s2a, t2a = _bn_stats(keys[4], width)
        w2a, b2a = _folded_conv(keys[5], 1, 5, width, width, wp, wp, s2a, t2a)
        s2b, t2b = _bn_stats(keys[6], width)
        w2b, b2b = _folded_conv(keys[7], 5, 1, width, width, wp, wp, s2b, t2b)
        params.update(w2a=w2a, b2a=b2a, w2b=w2b, b2b=b2b)
    else:
        raise ValueError('kernel_size must be either 3 or 5. Got {}.'.format(kernel_size))
    return params


# ---------------------------------------------------------------------------
# Forward pass (single jit; one fused pallas_call per H-chunk, usually one).
# ---------------------------------------------------------------------------
@functools.partial(jax.jit, static_argnames=("out_channels", "kernel_size", "dilation",
                                             "out_dtype", "image_vmem_budget"))
def regular_block_forward(params, x_nchw, *, out_channels, kernel_size=3, dilation=1,
                          out_dtype=jnp.float32, image_vmem_budget=None):
    B, in_channels, H, W = x_nchw.shape
    cp = params['w1'].shape[0]
    halo = dilation if kernel_size == 3 else 2      # conv2 row halo
    pw = dilation if kernel_size == 3 else 2        # conv2 column zero-padding
    OW = _round_up(W, 16)                           # lane/sublane friendly output width
    Wpad = _round_up(OW + 2 * pw, 16)
    th = _pick_row_tile(H, OW)
    Hpad = _round_up(H, th)
    rows_total = Hpad + 2 * halo

    # NCHW -> NHWC bf16, channel-pad once to the lane width, spatial pad for conv2 + row tiling.
    x = jnp.transpose(x_nchw, (0, 2, 3, 1)).astype(jnp.bfloat16)
    x = jnp.pad(x, ((0, 0),
                    (halo, Hpad - H + halo),
                    (pw, Wpad - W - pw),
                    (0, cp - in_channels)))

    # Precomputed validity masks (0 == conv zero-padding / row-tiling padding).
    rvalid = (jnp.arange(rows_total) >= halo) & (jnp.arange(rows_total) < H + halo)
    cvalid = (jnp.arange(Wpad) >= pw) & (jnp.arange(Wpad) < W + pw)
    m1_full = (rvalid[:, None] & cvalid[None, :]).astype(jnp.float32)          # (rows_total, Wpad)
    m2_full = (jnp.broadcast_to(rvalid[:, None], (rows_total, OW)).astype(jnp.float32)
               if kernel_size == 5 else None)

    # H-chunking so the per-batch resident image block fits the (generation-aware) VMEM budget.
    budget = image_vmem_budget if image_vmem_budget is not None else _image_vmem_budget()
    bytes_per_row = Wpad * cp * 2
    max_out_rows = max(budget // bytes_per_row - 2 * halo, 0)
    chunk = min(Hpad, max(th, (max_out_rows // th) * th))

    outs = []
    for c0 in range(0, Hpad, chunk):
        ch = min(chunk, Hpad - c0)
        hblk = ch + 2 * halo
        x_c = jax.lax.slice_in_dim(x, c0, c0 + hblk, axis=1)
        m1_c = jax.lax.slice_in_dim(m1_full, c0, c0 + hblk, axis=0).reshape(hblk * Wpad, 1)
        m2_c = (jax.lax.slice_in_dim(m2_full, c0, c0 + hblk, axis=0).reshape(hblk * OW, 1)
                if kernel_size == 5 else None)
        outs.append(_run_chunk(x_c, m1_c, m2_c, params, kernel_size=kernel_size,
                               dilation=dilation, th=th, OW=OW, halo=halo, pw=pw,
                               out_dtype=out_dtype))
    out = outs[0] if len(outs) == 1 else jnp.concatenate(outs, axis=1)

    out = out[:, :H, :W, :out_channels]
    return jnp.transpose(out, (0, 3, 1, 2))          # NHWC -> NCHW


if __name__ == "__main__":
    key = jax.random.PRNGKey(0)
    kp3, kp5, kx = jax.random.split(key, 3)
    B, C, H, W = 2, 64, 16, 16
    x = jax.random.normal(kx, (B, C, H, W), jnp.float32)

    # kernel_size=3 (default) path
    params3 = make_regular_block_params(kp3, C, C, kernel_size=3)
    out3 = jax.block_until_ready(
        regular_block_forward(params3, x, out_channels=C, kernel_size=3, dilation=1))
    assert out3.shape == (B, C, H, W), out3.shape
    assert bool(jnp.all(jnp.isfinite(out3)))

    # dilated 3x3 path
    out3d = jax.block_until_ready(
        regular_block_forward(params3, x, out_channels=C, kernel_size=3, dilation=2))
    assert out3d.shape == (B, C, H, W)
    assert bool(jnp.all(jnp.isfinite(out3d)))

    # force the H-chunked (large-image) code path and check it matches the single-chunk result
    out3c = jax.block_until_ready(
        regular_block_forward(params3, x, out_channels=C, kernel_size=3, dilation=1,
                              image_vmem_budget=64 * 1024))
    assert bool(jnp.allclose(out3, out3c, atol=1e-5, rtol=1e-5))

    # kernel_size=5 (asymmetric 1x5 / 5x1) path
    params5 = make_regular_block_params(kp5, C, C, kernel_size=5)
    out5 = jax.block_until_ready(
        regular_block_forward(params5, x, out_channels=C, kernel_size=5, dilation=1))
    assert out5.shape == (B, C, H, W)
    assert bool(jnp.all(jnp.isfinite(out5)))

    print("KERNEL_OK")
</pallas_src>

<mosaic_0001>
module attributes {stable_mosaic.version = 11 : i64} {
  func.func @_regular_block_kernel(%arg0: i32, %arg1: i32, %arg2: memref<1x18x32x128xbf16, #tpu.memory_space<vmem>>, %arg3: memref<576x1xf32, #tpu.memory_space<vmem>>, %arg4: memref<128x128xbf16, #tpu.memory_space<vmem>>, %arg5: memref<1x128xf32, #tpu.memory_space<vmem>>, %arg6: memref<9x128x128xbf16, #tpu.memory_space<vmem>>, %arg7: memref<1x128xf32, #tpu.memory_space<vmem>>, %arg8: memref<128x128xbf16, #tpu.memory_space<vmem>>, %arg9: memref<1x128xf32, #tpu.memory_space<vmem>>, %arg10: memref<1x3xf32, #tpu.memory_space<smem>>, %arg11: memref<1x8x16x128xf32, #tpu.memory_space<vmem>>) attributes {dimension_semantics = [#tpu.dimension_semantics<parallel>, #tpu.dimension_semantics<parallel>], iteration_bounds = array<i64: 2, 2>, scalar_prefetch = 0 : i64, scratch_operands = 0 : i64, tpu.core_type = #tpu.core_type<tc>, window_params = [{transform_indices = @transform_0, window_bounds = array<i64: 1, 18, 32, 128>}, {pipeline_mode = #tpu.pipeline_mode<synchronous>, transform_indices = @transform_1, window_bounds = array<i64: 576, 1>}, {pipeline_mode = #tpu.pipeline_mode<synchronous>, transform_indices = @transform_2, window_bounds = array<i64: 128, 128>}, {pipeline_mode = #tpu.pipeline_mode<synchronous>, transform_indices = @transform_3, window_bounds = array<i64: 1, 128>}, {pipeline_mode = #tpu.pipeline_mode<synchronous>, transform_indices = @transform_4, window_bounds = array<i64: 9, 128, 128>}, {pipeline_mode = #tpu.pipeline_mode<synchronous>, transform_indices = @transform_5, window_bounds = array<i64: 1, 128>}, {pipeline_mode = #tpu.pipeline_mode<synchronous>, transform_indices = @transform_6, window_bounds = array<i64: 128, 128>}, {pipeline_mode = #tpu.pipeline_mode<synchronous>, transform_indices = @transform_7, window_bounds = array<i64: 1, 128>}, {transform_indices = @transform_8, window_bounds = array<i64: 1, 3>}, {transform_indices = @transform_9, window_bounds = array<i64: 1, 8, 16, 128>}]} {
    %c8_i32 = arith.constant 8 : i32
    %0 = arith.muli %arg1, %c8_i32 : i32
    %1 = tpu.assume_multiple %0, 8 : i32
    %c0 = arith.constant 0 : index
    %2 = arith.index_cast %1 : i32 to index
    %c0_0 = arith.constant 0 : index
    %c0_1 = arith.constant 0 : index
    %3 = vector.load %arg2[%c0, %2, %c0_0, %c0_1] : memref<1x18x32x128xbf16, #tpu.memory_space<vmem>>, vector<1x10x32x128xbf16>
    %4 = vector.shape_cast %3 : vector<1x10x32x128xbf16> to vector<10x32x128xbf16>
    %5 = vector.shape_cast %4 : vector<10x32x128xbf16> to vector<320x128xbf16>
    %c0_2 = arith.constant 0 : index
    %c0_3 = arith.constant 0 : index
    %6 = vector.load %arg4[%c0_2, %c0_3] : memref<128x128xbf16, #tpu.memory_space<vmem>>, vector<128x128xbf16>
    %cst = arith.constant dense<0.000000e+00> : vector<320x128xf32>
    %7 = tpu.matmul %5, %6, %cst {dimension_numbers = #tpu.dot_dimension_numbers<[1], [0], [0], [1], [0, 0, 1, 1], [], []>} : vector<320x128xbf16>, vector<128x128xbf16>, vector<320x128xf32> -> vector<320x128xf32>
    %c0_4 = arith.constant 0 : index
    %c0_5 = arith.constant 0 : index
    %8 = vector.load %arg5[%c0_4, %c0_5] : memref<1x128xf32, #tpu.memory_space<vmem>>, vector<1x128xf32>
    %9 = vector.broadcast %8 : vector<1x128xf32> to vector<320x128xf32>
    %10 = arith.addf %7, %9 : vector<320x128xf32>
    %c0_6 = arith.constant 0 : index
    %c0_7 = arith.constant 0 : index
    %11 = memref.load %arg10[%c0_6, %c0_7] : memref<1x3xf32, #tpu.memory_space<smem>>
    %cst_8 = arith.constant 0.000000e+00 : f32
    %12 = vector.broadcast %cst_8 : f32 to vector<320x128xf32>
    %13 = arith.cmpf ogt, %10, %12 : vector<320x128xf32>
    %14 = vector.broadcast %11 : f32 to vector<320x128xf32>
    %15 = arith.mulf %14, %10 : vector<320x128xf32>
    %16 = arith.select %13, %10, %15 : vector<320x128xi1>, vector<320x128xf32>
    %c32_i32 = arith.constant 32 : i32
    %17 = arith.muli %1, %c32_i32 : i32
    %18 = tpu.assume_multiple %17, 128 : i32
    %19 = arith.index_cast %18 : i32 to index
    %c0_9 = arith.constant 0 : index
    %20 = vector.load %arg3[%19, %c0_9] : memref<576x1xf32, #tpu.memory_space<vmem>>, vector<320x1xf32>
    %21 = vector.broadcast %20 : vector<320x1xf32> to vector<320x128xf32>
    %22 = arith.mulf %16, %21 : vector<320x128xf32>
    %23 = arith.truncf %22 : vector<320x128xf32> to vector<320x128xbf16>
    %24 = vector.shape_cast %23 : vector<320x128xbf16> to vector<10x32x128xbf16>
    %c0_10 = arith.constant 0 : index
    %c1 = arith.constant 1 : index
    %25 = memref.load %arg10[%c0_10, %c1] : memref<1x3xf32, #tpu.memory_space<smem>>
    %cst_11 = arith.constant 0.000000e+00 : f32
    %26 = vector.broadcast %cst_11 : f32 to vector<128x128xf32>
    %27 = vector.extract_strided_slice %24 {offsets = [0, 0, 0], sizes = [10, 16, 128], strides = [1, 1, 1]} : vector<10x32x128xbf16> to vector<10x16x128xbf16>
    %28 = vector.extract_strided_slice %27 {offsets = [0, 0, 0], sizes = [8, 16, 128], strides = [1, 1, 1]} : vector<10x16x128xbf16> to vector<8x16x128xbf16>
    %29 = vector.shape_cast %28 : vector<8x16x128xbf16> to vector<128x128xbf16>
    %c0_12 = arith.constant 0 : index
    %c0_13 = arith.constant 0 : index
    %c0_14 = arith.constant 0 : index
    %30 = vector.load %arg6[%c0_12, %c0_13, %c0_14] : memref<9x128x128xbf16, #tpu.memory_space<vmem>>, vector<1x128x128xbf16>
    %31 = vector.shape_cast %30 : vector<1x128x128xbf16> to vector<128x128xbf16>
    %cst_15 = arith.constant dense<0.000000e+00> : vector<128x128xf32>
    %32 = tpu.matmul %29, %31, %cst_15 {dimension_numbers = #tpu.dot_dimension_numbers<[1], [0], [0], [1], [0, 0, 1, 1], [], []>} : vector<128x128xbf16>, vector<128x128xbf16>, vector<128x128xf32> -> vector<128x128xf32>
    %33 = arith.addf %26, %32 : vector<128x128xf32>
    %34 = vector.extract_strided_slice %27 {offsets = [1, 0, 0], sizes = [8, 16, 128], strides = [1, 1, 1]} : vector<10x16x128xbf16> to vector<8x16x128xbf16>
    %35 = vector.shape_cast %34 : vector<8x16x128xbf16> to vector<128x128xbf16>
    %c3 = arith.constant 3 : index
    %c0_16 = arith.constant 0 : index
    %c0_17 = arith.constant 0 : index
    %36 = vector.load %arg6[%c3, %c0_16, %c0_17] : memref<9x128x128xbf16, #tpu.memory_space<vmem>>, vector<1x128x128xbf16>
    %37 = vector.shape_cast %36 : vector<1x128x128xbf16> to vector<128x128xbf16>
    %cst_18 = arith.constant dense<0.000000e+00> : vector<128x128xf32>
    %38 = tpu.matmul %35, %37, %cst_18 {dimension_numbers = #tpu.dot_dimension_numbers<[1], [0], [0], [1], [0, 0, 1, 1], [], []>} : vector<128x128xbf16>, vector<128x128xbf16>, vector<128x128xf32> -> vector<128x128xf32>
    %39 = arith.addf %33, %38 : vector<128x128xf32>
    %40 = vector.extract_strided_slice %27 {offsets = [2, 0, 0], sizes = [8, 16, 128], strides = [1, 1, 1]} : vector<10x16x128xbf16> to vector<8x16x128xbf16>
    %41 = vector.shape_cast %40 : vector<8x16x128xbf16> to vector<128x128xbf16>
    %c6 = arith.constant 6 : index
    %c0_19 = arith.constant 0 : index
    %c0_20 = arith.constant 0 : index
    %42 = vector.load %arg6[%c6, %c0_19, %c0_20] : memref<9x128x128xbf16, #tpu.memory_space<vmem>>, vector<1x128x128xbf16>
    %43 = vector.shape_cast %42 : vector<1x128x128xbf16> to vector<128x128xbf16>
    %cst_21 = arith.constant dense<0.000000e+00> : vector<128x128xf32>
    %44 = tpu.matmul %41, %43, %cst_21 {dimension_numbers = #tpu.dot_dimension_numbers<[1], [0], [0], [1], [0, 0, 1, 1], [], []>} : vector<128x128xbf16>, vector<128x128xbf16>, vector<128x128xf32> -> vector<128x128xf32>
    %45 = arith.addf %39, %44 : vector<128x128xf32>
    %46 = vector.extract_strided_slice %24 {offsets = [0, 1, 0], sizes = [10, 16, 128], strides = [1, 1, 1]} : vector<10x32x128xbf16> to vector<10x16x128xbf16>
    %47 = vector.extract_strided_slice %46 {offsets = [0, 0, 0], sizes = [8, 16, 128], strides = [1, 1, 1]} : vector<10x16x128xbf16> to vector<8x16x128xbf16>
    %48 = vector.shape_cast %47 : vector<8x16x128xbf16> to vector<128x128xbf16>
    %c1_22 = arith.constant 1 : index
    %c0_23 = arith.constant 0 : index
    %c0_24 = arith.constant 0 : index
    %49 = vector.load %arg6[%c1_22, %c0_23, %c0_24] : memref<9x128x128xbf16, #tpu.memory_space<vmem>>, vector<1x128x128xbf16>
    %50 = vector.shape_cast %49 : vector<1x128x128xbf16> to vector<128x128xbf16>
    %cst_25 = arith.constant dense<0.000000e+00> : vector<128x128xf32>
    %51 = tpu.matmul %48, %50, %cst_25 {dimension_numbers = #tpu.dot_dimension_numbers<[1], [0], [0], [1], [0, 0, 1, 1], [], []>} : vector<128x128xbf16>, vector<128x128xbf16>, vector<128x128xf32> -> vector<128x128xf32>
    %52 = arith.addf %45, %51 : vector<128x128xf32>
    %53 = vector.extract_strided_slice %46 {offsets = [1, 0, 0], sizes = [8, 16, 128], strides = [1, 1, 1]} : vector<10x16x128xbf16> to vector<8x16x128xbf16>
    %54 = vector.shape_cast %53 : vector<8x16x128xbf16> to vector<128x128xbf16>
    %c4 = arith.constant 4 : index
    %c0_26 = arith.constant 0 : index
    %c0_27 = arith.constant 0 : index
    %55 = vector.load %arg6[%c4, %c0_26, %c0_27] : memref<9x128x128xbf16, #tpu.memory_space<vmem>>, vector<1x128x128xbf16>
    %56 = vector.shape_cast %55 : vector<1x128x128xbf16> to vector<128x128xbf16>
    %cst_28 = arith.constant dense<0.000000e+00> : vector<128x128xf32>
    %57 = tpu.matmul %54, %56, %cst_28 {dimension_numbers = #tpu.dot_dimension_numbers<[1], [0], [0], [1], [0, 0, 1, 1], [], []>} : vector<128x128xbf16>, vector<128x128xbf16>, vector<128x128xf32> -> vector<128x128xf32>
    %58 = arith.addf %52, %57 : vector<128x128xf32>
    %59 = vector.extract_strided_slice %46 {offsets = [2, 0, 0], sizes = [8, 16, 128], strides = [1, 1, 1]} : vector<10x16x128xbf16> to vector<8x16x128xbf16>
    %60 = vector.shape_cast %59 : vector<8x16x128xbf16> to vector<128x128xbf16>
    %c7 = arith.constant 7 : index
    %c0_29 = arith.constant 0 : index
    %c0_30 = arith.constant 0 : index
    %61 = vector.load %arg6[%c7, %c0_29, %c0_30] : memref<9x128x128xbf16, #tpu.memory_space<vmem>>, vector<1x128x128xbf16>
    %62 = vector.shape_cast %61 : vector<1x128x128xbf16> to vector<128x128xbf16>
    %cst_31 = arith.constant dense<0.000000e+00> : vector<128x128xf32>
    %63 = tpu.matmul %60, %62, %cst_31 {dimension_numbers = #tpu.dot_dimension_numbers<[1], [0], [0], [1], [0, 0, 1, 1], [], []>} : vector<128x128xbf16>, vector<128x128xbf16>, vector<128x128xf32> -> vector<128x128xf32>
    %64 = arith.addf %58, %63 : vector<128x128xf32>
    %65 = vector.extract_strided_slice %24 {offsets = [0, 2, 0], sizes = [10, 16, 128], strides = [1, 1, 1]} : vector<10x32x128xbf16> to vector<10x16x128xbf16>
    %66 = vector.extract_strided_slice %65 {offsets = [0, 0, 0], sizes = [8, 16, 128], strides = [1, 1, 1]} : vector<10x16x128xbf16> to vector<8x16x128xbf16>
    %67 = vector.shape_cast %66 : vector<8x16x128xbf16> to vector<128x128xbf16>
    %c2 = arith.constant 2 : index
    %c0_32 = arith.constant 0 : index
    %c0_33 = arith.constant 0 : index
    %68 = vector.load %arg6[%c2, %c0_32, %c0_33] : memref<9x128x128xbf16, #tpu.memory_space<vmem>>, vector<1x128x128xbf16>
    %69 = vector.shape_cast %68 : vector<1x128x128xbf16> to vector<128x128xbf16>
    %cst_34 = arith.constant dense<0.000000e+00> : vector<128x128xf32>
    %70 = tpu.matmul %67, %69, %cst_34 {dimension_numbers = #tpu.dot_dimension_numbers<[1], [0], [0], [1], [0, 0, 1, 1], [], []>} : vector<128x128xbf16>, vector<128x128xbf16>, vector<128x128xf32> -> vector<128x128xf32>
    %71 = arith.addf %64, %70 : vector<128x128xf32>
    %72 = vector.extract_strided_slice %65 {offsets = [1, 0, 0], sizes = [8, 16, 128], strides = [1, 1, 1]} : vector<10x16x128xbf16> to vector<8x16x128xbf16>
    %73 = vector.shape_cast %72 : vector<8x16x128xbf16> to vector<128x128xbf16>
    %c5 = arith.constant 5 : index
    %c0_35 = arith.constant 0 : index
    %c0_36 = arith.constant 0 : index
    %74 = vector.load %arg6[%c5, %c0_35, %c0_36] : memref<9x128x128xbf16, #tpu.memory_space<vmem>>, vector<1x128x128xbf16>
    %75 = vector.shape_cast %74 : vector<1x128x128xbf16> to vector<128x128xbf16>
    %cst_37 = arith.constant dense<0.000000e+00> : vector<128x128xf32>
    %76 = tpu.matmul %73, %75, %cst_37 {dimension_numbers = #tpu.dot_dimension_numbers<[1], [0], [0], [1], [0, 0, 1, 1], [], []>} : vector<128x128xbf16>, vector<128x128xbf16>, vector<128x128xf32> -> vector<128x128xf32>
    %77 = arith.addf %71, %76 : vector<128x128xf32>
    %78 = vector.extract_strided_slice %65 {offsets = [2, 0, 0], sizes = [8, 16, 128], strides = [1, 1, 1]} : vector<10x16x128xbf16> to vector<8x16x128xbf16>
    %79 = vector.shape_cast %78 : vector<8x16x128xbf16> to vector<128x128xbf16>
    %c8 = arith.constant 8 : index
    %c0_38 = arith.constant 0 : index
    %c0_39 = arith.constant 0 : index
    %80 = vector.load %arg6[%c8, %c0_38, %c0_39] : memref<9x128x128xbf16, #tpu.memory_space<vmem>>, vector<1x128x128xbf16>
    %81 = vector.shape_cast %80 : vector<1x128x128xbf16> to vector<128x128xbf16>
    %cst_40 = arith.constant dense<0.000000e+00> : vector<128x128xf32>
    %82 = tpu.matmul %79, %81, %cst_40 {dimension_numbers = #tpu.dot_dimension_numbers<[1], [0], [0], [1], [0, 0, 1, 1], [], []>} : vector<128x128xbf16>, vector<128x128xbf16>, vector<128x128xf32> -> vector<128x128xf32>
    %83 = arith.addf %77, %82 : vector<128x128xf32>
    %c0_41 = arith.constant 0 : index
    %c0_42 = arith.constant 0 : index
    %84 = vector.load %arg7[%c0_41, %c0_42] : memref<1x128xf32, #tpu.memory_space<vmem>>, vector<1x128xf32>
    %85 = vector.broadcast %84 : vector<1x128xf32> to vector<128x128xf32>
    %86 = arith.addf %83, %85 : vector<128x128xf32>
    %cst_43 = arith.constant 0.000000e+00 : f32
    %87 = vector.broadcast %cst_43 : f32 to vector<128x128xf32>
    %88 = arith.cmpf ogt, %86, %87 : vector<128x128xf32>
    %89 = vector.broadcast %25 : f32 to vector<128x128xf32>
    %90 = arith.mulf %89, %86 : vector<128x128xf32>
    %91 = arith.select %88, %86, %90 : vector<128x128xi1>, vector<128x128xf32>
    %92 = arith.truncf %91 : vector<128x128xf32> to vector<128x128xbf16>
    %c0_44 = arith.constant 0 : index
    %c0_45 = arith.constant 0 : index
    %93 = vector.load %arg8[%c0_44, %c0_45] : memref<128x128xbf16, #tpu.memory_space<vmem>>, vector<128x128xbf16>
    %cst_46 = arith.constant dense<0.000000e+00> : vector<128x128xf32>
    %94 = tpu.matmul %92, %93, %cst_46 {dimension_numbers = #tpu.dot_dimension_numbers<[1], [0], [0], [1], [0, 0, 1, 1], [], []>} : vector<128x128xbf16>, vector<128x128xbf16>, vector<128x128xf32> -> vector<128x128xf32>
    %c0_47 = arith.constant 0 : index
    %c0_48 = arith.constant 0 : index
    %95 = vector.load %arg9[%c0_47, %c0_48] : memref<1x128xf32, #tpu.memory_space<vmem>>, vector<1x128xf32>
    %96 = vector.broadcast %95 : vector<1x128xf32> to vector<128x128xf32>
    %97 = arith.addf %94, %96 : vector<128x128xf32>
    %c1_i32 = arith.constant 1 : i32
    %98 = arith.addi %1, %c1_i32 : i32
    %c0_49 = arith.constant 0 : index
    %99 = arith.index_cast %98 : i32 to index
    %c1_50 = arith.constant 1 : index
    %c0_51 = arith.constant 0 : index
    %100 = vector.load %arg2[%c0_49, %99, %c1_50, %c0_51] : memref<1x18x32x128xbf16, #tpu.memory_space<vmem>>, vector<1x8x16x128xbf16>
    %101 = vector.shape_cast %100 : vector<1x8x16x128xbf16> to vector<8x16x128xbf16>
    %102 = vector.shape_cast %101 : vector<8x16x128xbf16> to vector<128x128xbf16>
    %103 = arith.extf %102 : vector<128x128xbf16> to vector<128x128xf32>
    %104 = arith.addf %97, %103 : vector<128x128xf32>
    %c0_52 = arith.constant 0 : index
    %c2_53 = arith.constant 2 : index
    %105 = memref.load %arg10[%c0_52, %c2_53] : memref<1x3xf32, #tpu.memory_space<smem>>
    %cst_54 = arith.constant 0.000000e+00 : f32
    %106 = vector.broadcast %cst_54 : f32 to vector<128x128xf32>
    %107 = arith.cmpf ogt, %104, %106 : vector<128x128xf32>
    %108 = vector.broadcast %105 : f32 to vector<128x128xf32>
    %109 = arith.mulf %108, %104 : vector<128x128xf32>
    %110 = arith.select %107, %104, %109 : vector<128x128xi1>, vector<128x128xf32>
    %111 = vector.shape_cast %110 : vector<128x128xf32> to vector<8x16x128xf32>
    %c0_55 = arith.constant 0 : index
    %c0_56 = arith.constant 0 : index
    %c0_57 = arith.constant 0 : index
    %c0_58 = arith.constant 0 : index
    %112 = vector.load %arg11[%c0_55, %c0_56, %c0_57, %c0_58] : memref<1x8x16x128xf32, #tpu.memory_space<vmem>>, vector<1x8x16x128xf32>
    %113 = vector.shape_cast %112 : vector<1x8x16x128xf32> to vector<8x16x128xf32>
    %114 = vector.shape_cast %111 : vector<8x16x128xf32> to vector<1x8x16x128xf32>
    tpu.vector_store %arg11[%c0_55, %c0_56, %c0_57, %c0_58], %114 {strides = array<i32>} : memref<1x8x16x128xf32, #tpu.memory_space<vmem>>, vector<1x8x16x128xf32>,
    return
  }
  func.func @transform_0(%arg0: i32, %arg1: i32) -> (i32, i32, i32, i32) {
    %c0_i32 = arith.constant 0 : i32
    %c0_i32_0 = arith.constant 0 : i32
    %c0_i32_1 = arith.constant 0 : i32
    %c0_i32_2 = arith.constant 0 : i32
    return %arg0, %c0_i32, %c0_i32_0, %c0_i32_1 : i32, i32, i32, i32
  }
  func.func @transform_1(%arg0: i32, %arg1: i32) -> (i32, i32) {
    %c0_i32 = arith.constant 0 : i32
    %c0_i32_0 = arith.constant 0 : i32
    %c0_i32_1 = arith.constant 0 : i32
    return %c0_i32, %c0_i32_0 : i32, i32
  }
  func.func @transform_2(%arg0: i32, %arg1: i32) -> (i32, i32) {
    %c0_i32 = arith.constant 0 : i32
    %c0_i32_0 = arith.constant 0 : i32
    %c0_i32_1 = arith.constant 0 : i32
    return %c0_i32, %c0_i32_0 : i32, i32
  }
  func.func @transform_3(%arg0: i32, %arg1: i32) -> (i32, i32) {
    %c0_i32 = arith.constant 0 : i32
    %c0_i32_0 = arith.constant 0 : i32
    %c0_i32_1 = arith.constant 0 : i32
    return %c0_i32, %c0_i32_0 : i32, i32
  }
  func.func @transform_4(%arg0: i32, %arg1: i32) -> (i32, i32, i32) {
    %c0_i32 = arith.constant 0 : i32
    %c0_i32_0 = arith.constant 0 : i32
    %c0_i32_1 = arith.constant 0 : i32
    %c0_i32_2 = arith.constant 0 : i32
    return %c0_i32, %c0_i32_0, %c0_i32_1 : i32, i32, i32
  }
  func.func @transform_5(%arg0: i32, %arg1: i32) -> (i32, i32) {
    %c0_i32 = arith.constant 0 : i32
    %c0_i32_0 = arith.constant 0 : i32
    %c0_i32_1 = arith.constant 0 : i32
    return %c0_i32, %c0_i32_0 : i32, i32
  }
  func.func @transform_6(%arg0: i32, %arg1: i32) -> (i32, i32) {
    %c0_i32 = arith.constant 0 : i32
    %c0_i32_0 = arith.constant 0 : i32
    %c0_i32_1 = arith.constant 0 : i32
    return %c0_i32, %c0_i32_0 : i32, i32
  }
  func.func @transform_7(%arg0: i32, %arg1: i32) -> (i32, i32) {
    %c0_i32 = arith.constant 0 : i32
    %c0_i32_0 = arith.constant 0 : i32
    %c0_i32_1 = arith.constant 0 : i32
    return %c0_i32, %c0_i32_0 : i32, i32
  }
  func.func @transform_8(%arg0: i32, %arg1: i32) -> (i32, i32) {
    %c0_i32 = arith.constant 0 : i32
    %c0_i32_0 = arith.constant 0 : i32
    %c0_i32_1 = arith.constant 0 : i32
    return %c0_i32, %c0_i32_0 : i32, i32
  }
  func.func @transform_9(%arg0: i32, %arg1: i32) -> (i32, i32, i32, i32) {
    %c0_i32 = arith.constant 0 : i32
    %c0_i32_0 = arith.constant 0 : i32
    %c0_i32_1 = arith.constant 0 : i32
    return %arg0, %arg1, %c0_i32, %c0_i32_0 : i32, i32, i32, i32
  }
}

</mosaic_0001>

<bundles_post_ra>
// kernel: regular_block_forward.1
= control target key start
LH: loop header
LB: loop body
LE: loop exit
PB: predicated region body
PF: predicated region fallthrough
CT: control target
= control target key end

     0   :  { %14 = vsyncpa [#allocation3], 0  ;;  %s4953_s30 = smov 0   ;;  %s4955_s10 = smov 0   ;;  %s5992_s0 = inlined_call_operand.vmem [shape: bf16[2,18,32,128], index: 0, kind: input, shape index: {}]   ;;  %s5993_s1 = inlined_call_operand.vmem [shape: f32[576,1], index: 1, kind: input, shape index: {}]   ;;  %s5994_s2 = inlined_call_operand.vmem [shape: bf16[128,128], index: 2, kind: input, shape index: {}]   ;;  %s5995_s3 = inlined_call_operand.vmem [shape: f32[1,128], index: 3, kind: input, shape index: {}]   ;;  %s5996_s4 = inlined_call_operand.vmem [shape: bf16[9,128,128], index: 4, kind: input, shape index: {}]   ;;  %s5997_s5 = inlined_call_operand.vmem [shape: f32[1,128], index: 5, kind: input, shape index: {}]   ;;  %s5998_s6 = inlined_call_operand.vmem [shape: bf16[128,128], index: 6, kind: input, shape index: {}]   ;;  %s5999_s7 = inlined_call_operand.vmem [shape: f32[1,128], index: 7, kind: input, shape index: {}]   ;;  %s6000_s8 = inlined_call_operand.vmem [shape: f32[1,3], index: 8, kind: input, shape index: {}]   ;;  %s6001_s9 = inlined_call_operand.vmem [shape: f32[2,16,16,128], index: 9, kind: output, shape index: {}]  }
   0x1   :  { %s4957_s11 = smov 0   ;;  %s4959_s12 = smov 0  }
   0x2   :  { %s4961_s13 = smov 0  }
   0x3 LB: > { %s3682_s14 = sadd.s32 4294967295, %s4899_s13   ;;  %s29_s15 = sadd.s32 1, %s4891_s11  ;;  %s4899_s13 = sphi %s4961_s13, %s20_s13   ;;  %s4895_s12 = sphi %s4959_s12, %s6010_s12   ;;  %s4891_s11 = sphi %s4957_s11, %s6009_s11   ;;  %s4887_s10 = sphi %s4955_s10, %s6008_s10   ;;  %s4883_s30 = sphi %s4953_s30, %s6007_s30  }
   0x4   : > { %p30_p0 = scmp.ge.s32.totalorder %s29_s15, 2  ;;  %s32_s16 = sadd.s32 1, %s4895_s12 }
   0x5   : > { %p3684_p1 = scmp.ge.s32.totalorder %s4899_s13, 1  ;;  %p259_p2 = scmp.lt.s32.totalorder %s4899_s13, 5 }
   0x6   : > { %s6012_s15 = smov (%p30_p0, %s29_s15), 0  ;;  %s6014_s16 = smov (!%p30_p0, %s32_s16), %s4895_s12 }
   0x7   : > { %p4986_p3 = pnand %p3684_p1, %p259_p2  ;;  %p34_p4 = scmp.ge.s32.totalorder %s6014_s16, 2 }
   0x8   : > { %p4990_p5 = scmp.eq.s32.totalorder %s3682_s14, 0  ;;  %s293_s21 = sshll.u32 %s6000_s8, 4  ;;  %s294_s21 = int_to_ptr.vmem [resolvable:$true] %s293_s21 }
   0x9   : > { %p4684_p6 = pneg %p4986_p3  ;;  %s6016_s16 = smov (%p34_p4, %s6014_s16), 0 }
   0xa   : > { %s4842_s22 = scalar_lea.vmem %s294_s21, 16  ;;  %p4850_p12 = scmp.lt.s32.totalorder %s294_s21, %s294_s21 }
   0xb   : > { %p4685_p7 = pnand %p4990_p5, %p4684_p6  ;;  %p4843_p8 = scmp.ne.s32.totalorder %s294_s21, %s4842_s22 }
   0xc   : > { %p4851_p13 = scmp.lt.s32.totalorder %s4842_s22, %s4842_s22 }
   0xd   : > { %p4844_p9 = pneg %p4685_p7 }
   0xe   : > { %p4852_p0 = por %p4851_p13, %p4850_p12 }
   0xf   : > { %p4845_p10 = pnand %p4844_p9, %p4843_p8 }
  0x11   : > { %p4846_p11 = pneg %p4845_p10 }
  0x13   : > { %p4853_p1 = pnand %p4852_p0, %p4846_p11 }
  0x15   : > { %4856 = shalt.err (!%p4853_p1)
}
  0x16   : > { %s4901_s23 = smov [#allocation2]   ;;  %314 = sbr.rel (%p4986_p3) target bundleno = 962 (0x3c2), region = 56 }
  0x17   : > { %4687 = dma.vmem_to_smem (!%p4685_p7), %s294_s21, 16, %s4901_s23, [#allocation3]  }
  0x1d   : > { %4878 = dma.done.wait (%p4990_p5), [#allocation3], 16  }
  0x1e   : > { %4880 = vsyncadd (%p4990_p5), [#allocation3], 4294967280 }
  0x1f   : > { %320 = sfence }
  0x20   : > { %v4734_v0 = vld [vmem:[%s5994_s2] sm:$0xff]   ;;  %p356_p2 = scmp.lt.s32.totalorder %s4887_s10, 1  ;;  %v4735_v1 = vld [vmem:[%s5994_s2 + $0x8] sm:$0xff]   ;;  %s3968_s28 = sshll.u32 %s4883_s30, 7  ;;  %v4736_v2 = vld [vmem:[%s5994_s2 + $0x10] sm:$0xff]   ;;  %v4902_v3 = vmov 0  }
  0x21   : > { %4159 = vmatprep.subr.bf16.mxu0 %v4734_v0  ;;  %4733 = vset.pattern.permute.xlu1 %v4902_v3  ;;  %s3969_s21 = sshll.u32 %s4883_s30, 8  ;;  %v4737_v4 = vld [vmem:[%s5994_s2 + $0x18] sm:$0xff]   ;;  %v4738_v6 = vld [vmem:[%s5994_s2 + $0x20] sm:$0xff]   ;;  %v4739_v11 = vld [vmem:[%s5994_s2 + $0x28] sm:$0xff]   ;;  %s801_s19 = sld [smem:[#allocation2]] }
  0x22   : > { %s6018_s10 = smov (!%p356_p2, %s4887_s10), 1  ;;  %4160 = vmatpush3.bf16.msra.mxu0 %v4734_v0  ;;  %4732 = vset.pattern.permute.xlu0 %v4902_v3  ;;  %s5037_s27 = scalar_lea.vmem %s5993_s1, %s3969_s21  ;;  %v4740_v14 = vld [vmem:[%s5994_s2 + $0x30] sm:$0xff]   ;;  %v4741_v17 = vld [vmem:[%s5994_s2 + $0x38] sm:$0xff]   ;;  %v4762_v59 = vld [vmem:[%s5996_s4 + $0x40] sm:$0xff]   ;;  %vm1727_vm8 = vsmask.f32 7424 }
  0x23   : > { %4161 = vmatprep.subr.bf16.mxu0 %v4735_v1  ;;  %s4679_s17 = smul.u32 288, %s6018_s10  ;;  %v929_v7 = vld [vmem:[%s5037_s27 + $0x20] sm:$0xff]  ;;  %v930_v9 = vld [vmem:[%s5037_s27 + $0x28] sm:$0xff]  ;;  %v928_v12 = vld [vmem:[%s5037_s27 + $0x18] sm:$0xff]  ;;  %4311 = vmatprep.subr.bf16.mxu1 %v4762_v59  ;;  %s5819_s21 = sld [smem:[#allocation2 + $0x2]] }
  0x24   : > { %v925_v8 = vld [vmem:[%s5037_s27] sm:$0xff]  ;;  %987 = vperm.xlu1 %4733, %v929_v7   ;;  %v926_v10 = vld [vmem:[%s5037_s27 + $0x8] sm:$0xff]  ;;  %v927_v13 = vld [vmem:[%s5037_s27 + $0x10] sm:$0xff]  ;;  %4312 = vmatpush3.bf16.msra.mxu1 %v4762_v59  ;;  %s3692_s22 = sshll.u32 %s6018_s10, 5 }
  0x25   : > { %s360_s20 = scalar_lea.vmem %s5992_s0, %s4679_s17  ;;  %967 = vperm.xlu0 %4732, %v925_v8   ;;  %v932_v15 = vld [vmem:[%s5037_s27 + $0x38] sm:$0xff]  ;;  %v931_v16 = vld [vmem:[%s5037_s27 + $0x30] sm:$0xff]  ;;  %v934_v18 = vld [vmem:[%s5037_s27 + $0x48] sm:$0xff]  ;;  %s3727_s17 = sld [smem:[#allocation2 + $0x1]] }
  0x26   : > { %4162 = vmatpush3.bf16.msra.mxu0 %v4735_v1  ;;  %s5031_s24 = scalar_lea.vmem %s360_s20, %s3968_s28  ;;  %v933_v19 = vld [vmem:[%s5037_s27 + $0x40] sm:$0xff]  ;;  %v938_v21 = vld [vmem:[%s5037_s27 + $0x68] sm:$0xff]  ;;  %v936_v24 = vld [vmem:[%s5037_s27 + $0x58] sm:$0xff] }
  0x27   : > { %4163 = vmatprep.subr.bf16.mxu0 %v4736_v2  ;;  %v4742_v5 = vld [vmem:[%s5031_s24] sm:$0xff]   ;;  %v4743_v20 = vld [vmem:[%s5031_s24 + $0x8] sm:$0xff]   ;;  %v4744_v23 = vld [vmem:[%s5031_s24 + $0x10] sm:$0xff]  }
  0x28   : > { %4175 = vmatprep.mubr.bf16.mxu0 %v4742_v5  ;;  %992 = vperm.xlu1 %4733, %v930_v9   ;;  %v937_v22 = vld [vmem:[%s5037_s27 + $0x60] sm:$0xff]  ;;  %v935_v25 = vld [vmem:[%s5037_s27 + $0x50] sm:$0xff]  ;;  %v4745_v26 = vld [vmem:[%s5031_s24 + $0x18] sm:$0xff]  }
  0x29   : > { %972 = vperm.xlu0 %4732, %v926_v10   ;;  %v940_v27 = vld [vmem:[%s5037_s27 + $0x78] sm:$0xff]  ;;  %v939_v28 = vld [vmem:[%s5037_s27 + $0x70] sm:$0xff]  ;;  %v4746_v29 = vld [vmem:[%s5031_s24 + $0x20] sm:$0xff]  }
  0x2a   : > { %4164 = vmatpush3.bf16.msra.mxu0 %v4736_v2  ;;  %v942_v30 = vld [vmem:[%s5037_s27 + $0x88] sm:$0xff]  ;;  %v941_v31 = vld [vmem:[%s5037_s27 + $0x80] sm:$0xff]  ;;  %v4748_v35 = vld [vmem:[%s5031_s24 + $0x30] sm:$0xff]  }
  0x2b   : > { %4165 = vmatprep.subr.bf16.mxu0 %v4737_v4  ;;  %v4747_v32 = vld [vmem:[%s5031_s24 + $0x28] sm:$0xff]   ;;  %v945_v34 = vld [vmem:[%s5037_s27 + $0xa0] sm:$0xff]  ;;  %v944_v36 = vld [vmem:[%s5037_s27 + $0x98] sm:$0xff] }
  0x2c   : > { %982 = vperm.xlu1 %4733, %v928_v12   ;;  %v946_v33 = vld [vmem:[%s5037_s27 + $0xa8] sm:$0xff]  ;;  %v943_v37 = vld [vmem:[%s5037_s27 + $0x90] sm:$0xff]  ;;  %v4749_v38 = vld [vmem:[%s5031_s24 + $0x38] sm:$0xff]  }
  0x2d   : > { %977 = vperm.xlu0 %4732, %v927_v13   ;;  %v948_v39 = vld [vmem:[%s5037_s27 + $0xb8] sm:$0xff]  ;;  %v947_v40 = vld [vmem:[%s5037_s27 + $0xb0] sm:$0xff]  ;;  %v4750_v41 = vld [vmem:[%s5031_s24 + $0x40] sm:$0xff]  }
  0x2e   : > { %4166 = vmatpush3.bf16.msra.mxu0 %v4737_v4  ;;  %v950_v42 = vld [vmem:[%s5037_s27 + $0xc8] sm:$0xff]  ;;  %v949_v43 = vld [vmem:[%s5037_s27 + $0xc0] sm:$0xff]  ;;  %v4752_v47 = vld [vmem:[%s5031_s24 + $0x50] sm:$0xff]  }
  0x2f   : > { %4167 = vmatprep.subr.bf16.mxu0 %v4738_v6  ;;  %v4751_v44 = vld [vmem:[%s5031_s24 + $0x48] sm:$0xff]   ;;  %v953_v46 = vld [vmem:[%s5037_s27 + $0xe0] sm:$0xff]  ;;  %v952_v48 = vld [vmem:[%s5037_s27 + $0xd8] sm:$0xff] }
  0x30   : > { %1002 = vperm.xlu1 %4733, %v932_v15   ;;  %v954_v45 = vld [vmem:[%s5037_s27 + $0xe8] sm:$0xff]  ;;  %v951_v49 = vld [vmem:[%s5037_s27 + $0xd0] sm:$0xff]  ;;  %v4753_v50 = vld [vmem:[%s5031_s24 + $0x58] sm:$0xff]  }
  0x31   : > { %997 = vperm.xlu0 %4732, %v931_v16   ;;  %v956_v51 = vld [vmem:[%s5037_s27 + $0xf8] sm:$0xff]  ;;  %v955_v52 = vld [vmem:[%s5037_s27 + $0xf0] sm:$0xff]  ;;  %v4754_v53 = vld [vmem:[%s5031_s24 + $0x60] sm:$0xff]  }
  0x32   : > { %4168 = vmatpush3.bf16.msra.mxu0 %v4738_v6  ;;  %v958_v54 = vld [vmem:[%s5037_s27 + $0x108] sm:$0xff]  ;;  %v957_v55 = vld [vmem:[%s5037_s27 + $0x100] sm:$0xff]  ;;  %v960_v57 = vld [vmem:[%s5037_s27 + $0x118] sm:$0xff] }
  0x33   : > { %4169 = vmatprep.subr.bf16.mxu0 %v4739_v11  ;;  %v4755_v56 = vld [vmem:[%s5031_s24 + $0x68] sm:$0xff]   ;;  %v959_v58 = vld [vmem:[%s5037_s27 + $0x110] sm:$0xff]  ;;  %v4763_v60 = vld [vmem:[%s5996_s4 + $0xc0] sm:$0xff]  }
  0x34   : > { %1012 = vperm.xlu1 %4733, %v934_v18   ;;  %v4756_v61 = vld [vmem:[%s5031_s24 + $0x70] sm:$0xff]   ;;  %v962_v62 = vld [vmem:[%s5037_s27 + $0x128] sm:$0xff]  ;;  %v961_v63 = vld [vmem:[%s5037_s27 + $0x120] sm:$0xff] }
  0x35   : > { %1007 = vperm.xlu0 %4732, %v933_v19   ;;  %v4757_v0 = vld [vmem:[%s5031_s24 + $0x78] sm:$0xff]   ;;  %v963_v2 = vld [vmem:[%s5037_s27 + $0x130] sm:$0xff]  ;;  %v4758_v3 = vld [vmem:[%s5031_s24 + $0x80] sm:$0xff]  }
  0x36   : > { %4170 = vmatpush3.bf16.msra.mxu0 %v4739_v11  ;;  %v964_v1 = vld [vmem:[%s5037_s27 + $0x138] sm:$0xff]  ;;  %v4759_v4 = vld [vmem:[%s5031_s24 + $0x88] sm:$0xff]   ;;  %v4760_v5 = vld [vmem:[%s5031_s24 + $0x90] sm:$0xff]  }
  0x37   : > { %4171 = vmatprep.subr.bf16.mxu0 %v4740_v14  ;;  %v4761_v6 = vld [vmem:[%s5031_s24 + $0x98] sm:$0xff]   ;;  %v4764_v7 = vld [vmem:[%s5996_s4 + $0x48] sm:$0xff]   ;;  %v4766_v9 = vld [vmem:[%s5996_s4 + $0x50] sm:$0xff]  }
  0x38   : > { %1032 = vperm.xlu1 %4733, %v938_v21   ;;  %v4765_v8 = vld [vmem:[%s5996_s4 + $0xc8] sm:$0xff]   ;;  %4313 = vmatprep.subr.bf16.mxu1 %v4764_v7  ;;  %v4767_v10 = vld [vmem:[%s5996_s4 + $0xd0] sm:$0xff]   ;;  %v4768_v11 = vld [vmem:[%s5996_s4 + $0x58] sm:$0xff]  }
  0x39   : > { %1027 = vperm.xlu0 %4732, %v937_v22   ;;  %4314 = vmatpush3.bf16.msra.mxu1 %v4764_v7  ;;  %v4769_v12 = vld [vmem:[%s5996_s4 + $0xd8] sm:$0xff]   ;;  %v4770_v13 = vld [vmem:[%s5996_s4 + $0x60] sm:$0xff]   ;;  %v4772_v15 = vld [vmem:[%s5996_s4 + $0x68] sm:$0xff]  }
  0x3a   : > { %4172 = vmatpush3.bf16.msra.mxu0 %v4740_v14  ;;  %4315 = vmatprep.subr.bf16.mxu1 %v4766_v9  ;;  %v4771_v14 = vld [vmem:[%s5996_s4 + $0xe0] sm:$0xff]   ;;  %v4773_v16 = vld [vmem:[%s5996_s4 + $0xe8] sm:$0xff]   ;;  %v4775_v18 = vld [vmem:[%s5996_s4 + $0xf0] sm:$0xff]  }
  0x3b   : > { %4173 = vmatprep.subr.bf16.mxu0 %v4741_v17  ;;  %v4776_v19 = vld [vmem:[%s5996_s4 + $0x78] sm:$0xff]   ;;  %v5161_v21 = vld [vmem:[%s5996_s4 + $0x100] sm:$0xff]  }
  0x3c   : > { %1022 = vperm.xlu1 %4733, %v936_v24   ;;  %v5166_v22 = vld [vmem:[%s5996_s4] sm:$0xff]  }
  0x3d   : > { %1017 = vperm.xlu0 %4732, %v935_v25   ;;  %4316 = vmatpush3.bf16.msra.mxu1 %v4766_v9 }
  0x3e   : > { %4174 = vmatpush3.bf16.msra.mxu0 %v4741_v17  ;;  %4317 = vmatprep.subr.bf16.mxu1 %v4768_v11  ;;  %v4774_v17 = vld [vmem:[%s5996_s4 + $0x70] sm:$0xff]  }
  0x3f   : > { %4215 = vmatprep.subr.bf16.mxu0 %v4763_v60 }
  0x40   : > { %1042 = vperm.xlu1 %4733, %v940_v27  }
  0x41   : > { %4176 = vmatmul.mubr.bf16.vlgmr.msra.gmra.mrb[0].mxu0 %v4743_v20  ;;  %1037 = vperm.xlu0 %4732, %v939_v28   ;;  %v4777_v20 = vld [vmem:[%s5996_s4 + $0xf8] sm:$0xff]  }
  0x42   : > { %4179 = vmatprep.mubr.bf16.mxu0 %v4744_v23  ;;  %4216 = vmatpush3.bf16.msra.mxu0 %v4763_v60 }
  0x43   : > { %4217 = vmatprep.subr.bf16.mxu0 %v4765_v8  ;;  %4318 = vmatpush3.bf16.msra.mxu1 %v4768_v11 }
  0x44   : > { %1052 = vperm.xlu1 %4733, %v942_v30   ;;  %4319 = vmatprep.subr.bf16.mxu1 %v4770_v13 }
  0x45   : > { %1047 = vperm.xlu0 %4732, %v941_v31  }
  0x46   : > { %4218 = vmatpush3.bf16.msra.mxu0 %v4765_v8 }
  0x47   : > { %4219 = vmatprep.subr.bf16.mxu0 %v4767_v10  ;;  %4320 = vmatpush3.bf16.msra.mxu1 %v4770_v13 }
  0x48   : > { %1072 = vperm.xlu1 %4733, %v946_v33   ;;  %4321 = vmatprep.subr.bf16.mxu1 %v4772_v15 }
  0x49   : > { %4180 = vmatmul.mubr.bf16.gmra.mrb[4].mxu0 %v4745_v26  ;;  %1067 = vperm.xlu0 %4732, %v945_v34  }
  0x4a   : > { %4183 = vmatprep.mubr.bf16.mxu0 %v4746_v29  ;;  %4220 = vmatpush3.bf16.msra.mxu0 %v4767_v10 }
  0x4b   : > { %4221 = vmatprep.subr.bf16.mxu0 %v4769_v12  ;;  %4322 = vmatpush3.bf16.msra.mxu1 %v4772_v15 }
  0x4c   : > { %1062 = vperm.xlu1 %4733, %v944_v36   ;;  %4323 = vmatprep.subr.bf16.mxu1 %v4774_v17 }
  0x4d   : > { %1057 = vperm.xlu0 %4732, %v943_v37  }
  0x4e   : > { %4222 = vmatpush3.bf16.msra.mxu0 %v4769_v12 }
  0x4f   : > { %4223 = vmatprep.subr.bf16.mxu0 %v4771_v14  ;;  %4324 = vmatpush3.bf16.msra.mxu1 %v4774_v17 }
  0x50   : > { %1082 = vperm.xlu1 %4733, %v948_v39   ;;  %4325 = vmatprep.subr.bf16.mxu1 %v4776_v19 }
  0x51   : > { %4184 = vmatmul.mubr.bf16.gmra.mrb[8].mxu0 %v4747_v32  ;;  %1077 = vperm.xlu0 %4732, %v947_v40  }
  0x52   : > { %4187 = vmatprep.mubr.bf16.mxu0 %v4748_v35  ;;  %4224 = vmatpush3.bf16.msra.mxu0 %v4771_v14  ;;  %v5185_v35 = vld [vmem:[%s5995_s3] ss:$0 sm:$0xff] }
  0x53   : > { %4225 = vmatprep.subr.bf16.mxu0 %v4773_v16  ;;  %4326 = vmatpush3.bf16.msra.mxu1 %v4776_v19 }
  0x54   : > { %1092 = vperm.xlu1 %4733, %v950_v42   ;;  %4343 = vmatprep.subr.bf16.mxu1 %v5161_v21 }
  0x55   : > { %1087 = vperm.xlu0 %4732, %v949_v43  }
  0x56   : > { %4226 = vmatpush3.bf16.msra.mxu0 %v4773_v16 }
  0x57   : > { %4227 = vmatprep.subr.bf16.mxu0 %v4775_v18 }
  0x58   : > { %1112 = vperm.xlu1 %4733, %v954_v45  }
  0x59   : > { %4188 = vmatmul.mubr.bf16.gmra.mrb[12].mxu0 %v4749_v38  ;;  %1107 = vperm.xlu0 %4732, %v953_v46   ;;  %v5189_v38 = vstv %s801_s19  ;;  %s3690_s19 = sshll.u32 %s4883_s30, 3 }
  0x5a   : > { %4191 = vmatprep.mubr.bf16.mxu0 %v4750_v41  ;;  %4228 = vmatpush3.bf16.msra.mxu0 %v4775_v18  ;;  %p5815_p3 = scmp.lt.s32.totalorder %s3690_s19, 15 }
  0x5b   : > { %4229 = vmatprep.subr.bf16.mxu0 %v4777_v20 }
  0x5c   : > { %1102 = vperm.xlu1 %4733, %v952_v48   ;;  %s6020_s19 = smov (!%p5815_p3, %s3690_s19), 15 }
  0x5d   : > { %1097 = vperm.xlu0 %4732, %v951_v49   ;;  %s3691_s30 = sshll.u32 %s6020_s19, 1 }
  0x5e   : > { %4230 = vmatpush3.bf16.msra.mxu0 %v4777_v20  ;;  %s5866_s10 = sadd.s32 %s3692_s22, %s3691_s30 }
  0x5f   : > { %4247 = vmatprep.subr.bf16.mxu0 %v5166_v22  ;;  %s3693_s26 = sshll.u32 %s5866_s10, 3 }
  0x60   : > { %1122 = vperm.xlu1 %4733, %v956_v51   ;;  %s5904_s28 = scalar_lea.vmem %s6001_s9, %s3693_s26 }
  0x61   : > { %4192 = vmatmul.mubr.bf16.gmra.mrb[16].mxu0 %v4751_v44  ;;  %1117 = vperm.xlu0 %4732, %v955_v52  }
  0x62   : > { %4195 = vmatprep.mubr.bf16.mxu0 %v4752_v47 }
  0x64   : > { %1132 = vperm.xlu1 %4733, %v958_v54  }
  0x65   : > { %1127 = vperm.xlu0 %4732, %v957_v55  }
  0x68   : > { %1142 = vperm.xlu1 %4733, %v960_v57  }
  0x69   : > { %4196 = vmatmul.mubr.bf16.gmra.mrb[20].mxu0 %v4753_v50  ;;  %1137 = vperm.xlu0 %4732, %v959_v58  }
  0x6a   : > { %4199 = vmatprep.mubr.bf16.mxu0 %v4754_v53 }
  0x6c   : > { %1152 = vperm.xlu1 %4733, %v962_v62  }
  0x6d   : > { %1147 = vperm.xlu0 %4732, %v961_v63  }
  0x70   : > { %1162 = vperm.xlu1 %4733, %v964_v1  }
  0x71   : > { %4200 = vmatmul.mubr.bf16.gmra.mrb[24].mxu0 %v4755_v56  ;;  %1157 = vperm.xlu0 %4732, %v963_v2  }
  0x72   : > { %4203 = vmatprep.mubr.bf16.mxu0 %v4756_v61 }
  0x79   : > { %4204 = vmatmul.mubr.bf16.gmra.mrb[28].mxu0 %v4757_v0 }
  0x7a   : > { %4207 = vmatprep.mubr.bf16.mxu0 %v4758_v3 }
  0x81   : > { %4208 = vmatmul.mubr.bf16.gmra.mrb[32].mxu0 %v4759_v4 }
  0x82   : > { %4211 = vmatprep.mubr.bf16.mxu0 %v4760_v5 }
  0x89   : > { %4212 = vmatmul.mubr.bf16.gmra.mrb[36].mxu0 %v4761_v6 }
  0xa3   : > { %v5170_v24 = vpop.permute.xlu1 %987 }
  0xa4   : > { %v968_v23 = vpop.permute.xlu0 %967 }
  0xa7   : > { %v5172_v26 = vpop.permute.xlu1 %992 }
  0xa8   : > { %v973_v25 = vpop.permute.xlu0 %972 }
  0xab   : > { %v983_v28 = vpop.permute.xlu1 %982 }
  0xac   : > { %v978_v27 = vpop.permute.xlu0 %977 }
  0xaf   : > { %v1003_v30 = vpop.permute.xlu1 %1002 }
  0xb0   : > { %v998_v29 = vpop.permute.xlu0 %997 }
  0xb3   : > { %v5176_v32 = vpop.permute.xlu1 %1012 }
  0xb4   : > { %v5174_v31 = vpop.permute.xlu0 %1007 }
  0xb7   : > { %v5180_v34 = vpop.permute.xlu1 %1032 }
  0xb8   : > { %v5178_v33 = vpop.permute.xlu0 %1027 }
  0xbb   : > { %v5191_v39 = vpop.permute.xlu1 %1022 }
  0xbc   : > { %v5187_v36 = vpop.permute.xlu0 %1017 }
  0xbf   : > { %v5203_v54 = vpop.permute.xlu1 %1042 }
  0xc0   : > { %v5200_v51 = vpop.permute.xlu0 %1037 }
  0xc3   : > { %v5217_v10 = vpop.permute.xlu1 %1052 }
  0xc4   : > { %v5213_v7 = vpop.permute.xlu0 %1047 }
 0x114   : > { %v4177_v37 = vpop.f32.mrb[0].mxu0 }
 0x115   : > { %v651_v40 = vadd.f32 %v4177_v37, %v5185_v35  ;;  %v642_v41 = vpop.f32.mrb[1].mxu0 }
 0x116   : > { %v643_v42 = vadd.f32 %v5185_v35, %v642_v41  ;;  %v4178_v43 = vpop.f32.mrb[2].mxu0  ;;  %v5226_v41 = vpop.permute.xlu0 %1067 }
 0x117   : > { %vm804_vm0 = vcmp.gt.f32.partialorder %v651_v40, 0.0  ;;  %v845_v44 = vmul.f32 %v5189_v38, %v651_v40  ;;  %v654_v45 = vadd.f32 %v4178_v43, %v5185_v35  ;;  %v645_v46 = vpop.f32.mrb[3].mxu0 }
 0x118   : > { %vm802_vm1 = vcmp.gt.f32.partialorder %v643_v42, 0.0  ;;  %v843_v47 = vmul.f32 %v5189_v38, %v643_v42  ;;  %v646_v48 = vadd.f32 %v5185_v35, %v645_v46 }
 0x119   : > { %v885_v49 = vsel %vm804_vm0, %v651_v40, %v845_v44  ;;  %vm805_vm2 = vcmp.gt.f32.partialorder %v654_v45, 0.0  ;;  %v846_v50 = vmul.f32 %v5189_v38, %v654_v45  ;;  %v5232_v44 = vpop.permute.xlu1 %1072 }
 0x11a   : > { %v883_v52 = vsel %vm802_vm1, %v643_v42, %v843_v47  ;;  %vm803_vm3 = vcmp.gt.f32.partialorder %v646_v48, 0.0  ;;  %v844_v53 = vmul.f32 %v5189_v38, %v646_v48  ;;  %v1167_v56 = vmul.f32 %v978_v27, %v885_v49 }
 0x11b   : > { %v886_v55 = vsel %vm805_vm2, %v654_v45, %v846_v50  ;;  %v1165_v60 = vmul.f32 %v968_v23, %v883_v52  ;;  %vm2408_vm1 = vcmask 1046528  }
 0x11c   : > { %v1168_v57 = vmul.f32 %v983_v28, %v886_v55  ;;  %v884_v58 = vsel %vm803_vm3, %v646_v48, %v844_v53  ;;  %v4181_v59 = vpop.f32.mrb[4].mxu0 }
 0x11d   : > { %v1166_v61 = vmul.f32 %v973_v25, %v884_v58  ;;  %v667_v62 = vadd.f32 %v4181_v59, %v5185_v35  ;;  %v658_v63 = vpop.f32.mrb[5].mxu0 }
 0x11e   : > { %v659_v0 = vadd.f32 %v5185_v35, %v658_v63  ;;  %v4182_v1 = vpop.f32.mrb[6].mxu0  ;;  %v5207_v2 = vpack.c.bf16 %v1168_v57, %v1167_v56 }
 0x11f   : > { %v5209_v3 = vpack.c.bf16 %v1166_v61, %v1165_v60  ;;  %vm808_vm4 = vcmp.gt.f32.partialorder %v667_v62, 0.0  ;;  %v849_v4 = vmul.f32 %v5189_v38, %v667_v62  ;;  %v670_v5 = vadd.f32 %v4182_v1, %v5185_v35  ;;  %v661_v6 = vpop.f32.mrb[7].mxu0  ;;  %v5246_v61 = vpop.permute.xlu0 %1057 }
 0x120   : > { %vm806_vm5 = vcmp.gt.f32.partialorder %v659_v0, 0.0  ;;  %v847_v8 = vmul.f32 %v5189_v38, %v659_v0  ;;  %v662_v9 = vadd.f32 %v5185_v35, %v661_v6  ;;  %v1736_v23 = vshll.u32 %v5207_v2, 16 }
 0x121   : > { %v889_v11 = vsel %vm808_vm4, %v667_v62, %v849_v4  ;;  %vm809_vm6 = vcmp.gt.f32.partialorder %v670_v5, 0.0  ;;  %v850_v12 = vmul.f32 %v5189_v38, %v670_v5  ;;  %v1731_v16 = vshll.u32 %v5209_v3, 16 }
 0x122   : > { %v887_v13 = vsel %vm806_vm5, %v659_v0, %v847_v8  ;;  %vm807_vm7 = vcmp.gt.f32.partialorder %v662_v9, 0.0  ;;  %v848_v14 = vmul.f32 %v5189_v38, %v662_v9  ;;  %v1171_v17 = vmul.f32 %v998_v29, %v889_v11 }
 0x123   : > { %v890_v15 = vsel %vm809_vm6, %v670_v5, %v850_v12  ;;  %v1169_v25 = vmul.f32 %v5170_v24, %v887_v13  ;;  %v1733_v40 = vrot.slane %v1731_v16, 1  ;;  %v1738_v49 = vrot.slane %v1736_v23, 1  ;;  %v5251_v5 = vpop.permute.xlu1 %1062 }
 0x124   : > { %v1172_v18 = vmul.f32 %v1003_v30, %v890_v15  ;;  %v888_v19 = vsel %vm807_vm7, %v662_v9, %v848_v14  ;;  %v4185_v20 = vpop.f32.mrb[8].mxu0  ;;  %v1729_v30 = vshrl.u32 %v5209_v3, 16 }
 0x125   : > { %v1170_v27 = vmul.f32 %v5172_v26, %v888_v19  ;;  %v683_v28 = vadd.f32 %v4185_v20, %v5185_v35  ;;  %v674_v37 = vpop.f32.mrb[9].mxu0 }
 0x126   : > { %v5228_v42 = vpack.c.bf16 %v1172_v18, %v1171_v17  ;;  %v675_v43 = vadd.f32 %v5185_v35, %v674_v37  ;;  %v4186_v29 = vpop.f32.mrb[10].mxu0  ;;  %v1734_v53 = vor.u32 %v1733_v40, %v1729_v30  ;;  %v4781_v18 = vld [vmem:[%s5996_s4 + $0x8] sm:$0xff]   ;;  %v5272_v37 = vpop.permute.xlu0 %1077 }
 0x127   : > { %v5234_v45 = vpack.c.bf16 %v1170_v27, %v1169_v25  ;;  %vm812_vm9 = vcmp.gt.f32.partialorder %v683_v28, 0.0  ;;  %v853_v24 = vmul.f32 %v5189_v38, %v683_v28  ;;  %v686_v26 = vadd.f32 %v4186_v29, %v5185_v35  ;;  %v677_v46 = vpop.f32.mrb[11].mxu0  ;;  %v5279_v29 = vpop.permute.xlu1 %1082 }
 0x128   : > { %vm810_vm10 = vcmp.gt.f32.partialorder %v675_v43, 0.0  ;;  %v851_v47 = vmul.f32 %v5189_v38, %v675_v43  ;;  %v678_v48 = vadd.f32 %v5185_v35, %v677_v46  ;;  %v2413_v57 = vrot.slane %v5228_v42, 1 }
 0x129   : > { %v893_v50 = vsel %vm812_vm9, %v683_v28, %v853_v24  ;;  %vm813_vm11 = vcmp.gt.f32.partialorder %v686_v26, 0.0  ;;  %v854_v52 = vmul.f32 %v5189_v38, %v686_v26  ;;  %4231 = vmatprep.mubr.bf16.mxu0 %v5234_v45  ;;  %v1739_v60 = vsel %vm1727_vm8, %v1734_v53, %v1738_v49 }
 0x12a   : > { %v891_v55 = vsel %vm810_vm10, %v675_v43, %v851_v47  ;;  %vm811_vm12 = vcmp.gt.f32.partialorder %v678_v48, 0.0  ;;  %v852_v56 = vmul.f32 %v5189_v38, %v678_v48  ;;  %v1175_v58 = vmul.f32 %v5187_v36, %v893_v50  ;;  %4327 = vmatprep.mubr.bf16.mxu1 %v1739_v60  ;;  %v4780_v43 = vld [vmem:[%s5996_s4 + $0x108] sm:$0xff]  }
 0x12b   : > { %v894_v59 = vsel %vm813_vm11, %v686_v26, %v854_v52  ;;  %v1173_v62 = vmul.f32 %v5174_v31, %v891_v55  ;;  %v1743_v4 = vshll.u32 %v5234_v45, 16  ;;  %v1741_v9 = vshrl.u32 %v5234_v45, 16 }
 0x12c   : > { %v1176_v63 = vmul.f32 %v5191_v39, %v894_v59  ;;  %v892_v0 = vsel %vm811_vm12, %v678_v48, %v852_v56  ;;  %v4189_v1 = vpop.f32.mrb[12].mxu0  ;;  %v1748_v11 = vshll.u32 %v5228_v42, 16  ;;  %v2412_v14 = vrot.slane %v5234_v45, 1 }
 0x12d   : > { %v1174_v6 = vmul.f32 %v5176_v32, %v892_v0  ;;  %v699_v36 = vadd.f32 %v4189_v1, %v5185_v35  ;;  %v690_v8 = vpop.f32.mrb[13].mxu0  ;;  %v1745_v13 = vrot.slane %v1743_v4, 1  ;;  %v4785_v0 = vld [vmem:[%s5996_s4 + $0x18] sm:$0xff]   ;;  %v5313_v1 = vpop.permute.xlu0 %1087 }
 0x12e   : > { %v5257_v12 = vpack.c.bf16 %v1176_v63, %v1175_v58  ;;  %v691_v31 = vadd.f32 %v5185_v35, %v690_v8  ;;  %v4190_v39 = vpop.f32.mrb[14].mxu0  ;;  %v1750_v28 = vrot.slane %v1748_v11, 1  ;;  %v5317_v8 = vpop.permute.xlu1 %1092 }
 0x12f   : > { %v5261_v15 = vpack.c.bf16 %v1174_v6, %v1173_v62  ;;  %vm816_vm13 = vcmp.gt.f32.partialorder %v699_v36, 0.0  ;;  %v857_v32 = vmul.f32 %v5189_v38, %v699_v36  ;;  %v702_v16 = vadd.f32 %v4190_v39, %v5185_v35  ;;  %v693_v17 = vpop.f32.mrb[15].mxu0 }
 0x130   : > { %vm814_vm14 = vcmp.gt.f32.partialorder %v691_v31, 0.0  ;;  %v855_v19 = vmul.f32 %v5189_v38, %v691_v31  ;;  %v694_v20 = vadd.f32 %v5185_v35, %v693_v17  ;;  %v1746_v23 = vor.u32 %v1745_v13, %v1741_v9 }
 0x131   : > { %v897_v25 = vsel %vm816_vm13, %v699_v36, %v857_v32  ;;  %vm817_vm15 = vcmp.gt.f32.partialorder %v702_v16, 0.0  ;;  %v858_v27 = vmul.f32 %v5189_v38, %v702_v16  ;;  %4232 = vmatmul.mubr.bf16.vlgmr.msra.gmra.mrb[40].mxu0 %v5261_v15  ;;  %v1755_v46 = vshll.u32 %v5261_v15, 16 }
 0x132   : > { %v895_v40 = vsel %vm814_vm14, %v691_v31, %v855_v19  ;;  %vm815_vm0 = vcmp.gt.f32.partialorder %v694_v20, 0.0  ;;  %v856_v42 = vmul.f32 %v5189_v38, %v694_v20  ;;  %4248 = vmatpush3.bf16.msra.mxu0 %v5166_v22  ;;  %v1179_v30 = vmul.f32 %v5200_v51, %v897_v25  ;;  %v4783_v22 = vld [vmem:[%s5996_s4 + $0x10] sm:$0xff]  }
 0x133   : > { %v898_v24 = vsel %vm817_vm15, %v702_v16, %v858_v27  ;;  %v5283_v26 = vsel %vm1727_vm8, %v1746_v23, %v1750_v28  ;;  %4249 = vmatprep.subr.bf16.mxu0 %v4781_v18  ;;  %v1177_v47 = vmul.f32 %v5178_v33, %v895_v40  ;;  %v5293_v51 = vsel %vm2408_vm1, %v2412_v14, %v2413_v57  ;;  %v4784_v14 = vld [vmem:[%s5996_s4 + $0x118] sm:$0xff]  }
 0x134   : > { %v1180_v48 = vmul.f32 %v5203_v54, %v898_v24  ;;  %v896_v49 = vsel %vm815_vm0, %v694_v20, %v856_v42  ;;  %4328 = vmatmul.mubr.bf16.vlgmr.msra.gmra.mrb[0].mxu1 %v5283_v26  ;;  %v4193_v50 = vpop.f32.mrb[16].mxu0  ;;  %v1757_v56 = vrot.slane %v1755_v46, 1  ;;  %v1760_v58 = vshll.u32 %v5257_v12, 16  ;;  %v5339_v24 = vpop.permute.xlu0 %1107 }
 0x135   : > { %v1178_v52 = vmul.f32 %v5180_v34, %v896_v49  ;;  %v715_v53 = vadd.f32 %v4193_v50, %v5185_v35  ;;  %v706_v55 = vpop.f32.mrb[17].mxu0  ;;  %4344 = vmatpush3.bf16.msra.mxu1 %v5161_v21  ;;  %v1753_v60 = vshrl.u32 %v5261_v15, 16  ;;  %v4782_v34 = vld [vmem:[%s5996_s4 + $0x110] sm:$0xff]  }
 0x136   : > { %v5299_v33 = vpack.c.bf16 %v1180_v48, %v1179_v30  ;;  %v707_v54 = vadd.f32 %v5185_v35, %v706_v55  ;;  %v4194_v59 = vpop.f32.mrb[18].mxu0  ;;  %4345 = vmatprep.subr.bf16.mxu1 %v4780_v43  ;;  %4250 = vmatpush3.bf16.msra.mxu0 %v4781_v18  ;;  %v1762_v31 = vrot.slane %v1760_v58, 1  ;;  %v4787_v18 = vld [vmem:[%s5996_s4 + $0x20] sm:$0xff]  }
 0x137   : > { %v5306_v57 = vpack.c.bf16 %v1178_v52, %v1177_v47  ;;  %vm820_vm2 = vcmp.gt.f32.partialorder %v715_v53, 0.0  ;;  %v861_v62 = vmul.f32 %v5189_v38, %v715_v53  ;;  %v718_v21 = vadd.f32 %v4194_v59, %v5185_v35  ;;  %v709_v63 = vpop.f32.mrb[19].mxu0  ;;  %4251 = vmatprep.subr.bf16.mxu0 %v4783_v22  ;;  %v4789_v52 = vld [vmem:[%s5996_s4 + $0x28] sm:$0xff]  }
 0x138   : > { %vm818_vm3 = vcmp.gt.f32.partialorder %v707_v54, 0.0  ;;  %v859_v4 = vmul.f32 %v5189_v38, %v707_v54  ;;  %v710_v6 = vadd.f32 %v5185_v35, %v709_v63  ;;  %v1758_v36 = vor.u32 %v1757_v56, %v1753_v60 }
 0x139   : > { %v901_v9 = vsel %vm820_vm2, %v715_v53, %v861_v62  ;;  %vm821_vm4 = vcmp.gt.f32.partialorder %v718_v21, 0.0  ;;  %v862_v11 = vmul.f32 %v5189_v38, %v718_v21  ;;  %4235 = vmatprep.mubr.bf16.mxu0 %v5306_v57  ;;  %4346 = vmatpush3.bf16.msra.mxu1 %v4780_v43  ;;  %v1767_v17 = vshll.u32 %v5306_v57, 16  ;;  %v4788_v62 = vld [vmem:[%s5996_s4 + $0x128] sm:$0xff]  }
 0x13a   : > { %v899_v39 = vsel %vm818_vm3, %v707_v54, %v859_v4  ;;  %vm819_vm5 = vcmp.gt.f32.partialorder %v710_v6, 0.0  ;;  %v860_v13 = vmul.f32 %v5189_v38, %v710_v6  ;;  %4347 = vmatprep.subr.bf16.mxu1 %v4782_v34  ;;  %4252 = vmatpush3.bf16.msra.mxu0 %v4783_v22  ;;  %v5326_v16 = vsel %vm1727_vm8, %v1758_v36, %v1762_v31  ;;  %v5348_v22 = vpop.permute.xlu1 %1112  ;;  %v4791_v4 = vld [vmem:[%s5996_s4 + $0x30] sm:$0xff]  }
 0x13b   : > { %v902_v32 = vsel %vm821_vm4, %v718_v21, %v862_v11  ;;  %4253 = vmatprep.subr.bf16.mxu0 %v4785_v0  ;;  %v1183_v19 = vmul.f32 %v5246_v61, %v901_v9  ;;  %v1181_v20 = vmul.f32 %v5213_v7, %v899_v39  ;;  %4331 = vmatprep.mubr.bf16.mxu1 %v5326_v16  ;;  %v1769_v43 = vrot.slane %v1767_v17, 1 }
 0x13c   : > { %v1184_v23 = vmul.f32 %v5251_v5, %v902_v32  ;;  %v900_v25 = vsel %vm819_vm5, %v710_v6, %v860_v13  ;;  %v4197_v27 = vpop.f32.mrb[20].mxu0  ;;  %v1772_v30 = vshll.u32 %v5299_v33, 16  ;;  %v1765_v46 = vshrl.u32 %v5306_v57, 16  ;;  %v1098_v6 = vpop.permute.xlu0 %1097 }
 0x13d   : > { %v1182_v28 = vmul.f32 %v5217_v10, %v900_v25  ;;  %v731_v40 = vadd.f32 %v4197_v27, %v5185_v35  ;;  %v722_v42 = vpop.f32.mrb[21].mxu0  ;;  %4348 = vmatpush3.bf16.msra.mxu1 %v4782_v34  ;;  %v4786_v10 = vld [vmem:[%s5996_s4 + $0x120] sm:$0xff]  }
 0x13e   : > { %v5341_v61 = vpack.c.bf16 %v1184_v23, %v1183_v19  ;;  %v723_v7 = vadd.f32 %v5185_v35, %v722_v42  ;;  %v4198_v5 = vpop.f32.mrb[22].mxu0  ;;  %4349 = vmatprep.subr.bf16.mxu1 %v4784_v14  ;;  %4254 = vmatpush3.bf16.msra.mxu0 %v4785_v0  ;;  %v1770_v56 = vor.u32 %v1769_v43, %v1765_v46  ;;  %v1774_v59 = vrot.slane %v1772_v30, 1  ;;  %v1103_v13 = vpop.permute.xlu1 %1102 }
 0x13f   : > { %v5350_v47 = vpack.c.bf16 %v1182_v28, %v1181_v20  ;;  %vm824_vm6 = vcmp.gt.f32.partialorder %v731_v40, 0.0  ;;  %v865_v48 = vmul.f32 %v5189_v38, %v731_v40  ;;  %v734_v49 = vadd.f32 %v4198_v5, %v5185_v35  ;;  %v725_v50 = vpop.f32.mrb[23].mxu0  ;;  %4255 = vmatprep.subr.bf16.mxu0 %v4787_v18 }
 0x140   : > { %vm822_vm7 = vcmp.gt.f32.partialorder %v723_v7, 0.0  ;;  %v863_v53 = vmul.f32 %v5189_v38, %v723_v7  ;;  %v726_v55 = vadd.f32 %v5185_v35, %v725_v50  ;;  %v5366_v63 = vsel %vm1727_vm8, %v1770_v56, %v1774_v59  ;;  %v4792_v50 = vld [vmem:[%s5996_s4 + $0x138] sm:$0xff]  }
 0x141   : > { %v905_v58 = vsel %vm824_vm6, %v731_v40, %v865_v48  ;;  %vm825_vm9 = vcmp.gt.f32.partialorder %v734_v49, 0.0  ;;  %v866_v54 = vmul.f32 %v5189_v38, %v734_v49  ;;  %4236 = vmatmul.mubr.bf16.gmra.mrb[44].mxu0 %v5350_v47  ;;  %4350 = vmatpush3.bf16.msra.mxu1 %v4784_v14  ;;  %v1779_v0 = vshll.u32 %v5350_v47, 16  ;;  %v4793_v40 = vld [vmem:[%s5996_s4 + $0x38] sm:$0xff]  }
 0x142   : > { %v903_v60 = vsel %vm822_vm7, %v723_v7, %v863_v53  ;;  %vm823_vm10 = vcmp.gt.f32.partialorder %v726_v55, 0.0  ;;  %v864_v34 = vmul.f32 %v5189_v38, %v726_v55  ;;  %4351 = vmatprep.subr.bf16.mxu1 %v4786_v10  ;;  %4256 = vmatpush3.bf16.msra.mxu0 %v4787_v18  ;;  %v1187_v36 = vmul.f32 %v5272_v37, %v905_v58  ;;  %v5408_v58 = vld [vmem:[%s5996_s4 + $0x180] sm:$0xff]  }
 0x143   : > { %v906_v21 = vsel %vm825_vm9, %v734_v49, %v866_v54  ;;  %4257 = vmatprep.subr.bf16.mxu0 %v4789_v52  ;;  %v1185_v9 = vmul.f32 %v5226_v41, %v903_v60  ;;  %4332 = vmatmul.mubr.bf16.gmra.mrb[4].mxu1 %v5366_v63  ;;  %v1781_v18 = vrot.slane %v1779_v0, 1  ;;  %v1784_v19 = vshll.u32 %v5341_v61, 16 }
 0x144   : > { %v1188_v11 = vmul.f32 %v5279_v29, %v906_v21  ;;  %v904_v31 = vsel %vm823_vm10, %v726_v55, %v864_v34  ;;  %v4201_v39 = vpop.f32.mrb[24].mxu0  ;;  %v1777_v29 = vshrl.u32 %v5350_v47, 16 }
 0x145   : > { %v1186_v14 = vmul.f32 %v5232_v44, %v904_v31  ;;  %v747_v32 = vadd.f32 %v4201_v39, %v5185_v35  ;;  %v738_v17 = vpop.f32.mrb[25].mxu0  ;;  %4352 = vmatpush3.bf16.msra.mxu1 %v4786_v10  ;;  %v4790_v44 = vld [vmem:[%s5996_s4 + $0x130] sm:$0xff]   ;;  %v1786_v46 = vrot.slane %v1784_v19, 1  ;;  %v1118_v10 = vpop.permute.xlu0 %1117 }
 0x146   : > { %v5379_v20 = vpack.c.bf16 %v1188_v11, %v1187_v36  ;;  %v739_v41 = vadd.f32 %v5185_v35, %v738_v17  ;;  %v4202_v37 = vpop.f32.mrb[26].mxu0  ;;  %4353 = vmatprep.subr.bf16.mxu1 %v4788_v62  ;;  %4258 = vmatpush3.bf16.msra.mxu0 %v4789_v52  ;;  %v1782_v30 = vor.u32 %v1781_v18, %v1777_v29  ;;  %v1123_v52 = vpop.permute.xlu1 %1122 }
 0x147   : > { %v5386_v23 = vpack.c.bf16 %v1186_v14, %v1185_v9  ;;  %vm828_vm11 = vcmp.gt.f32.partialorder %v747_v32, 0.0  ;;  %v869_v25 = vmul.f32 %v5189_v38, %v747_v32  ;;  %v750_v27 = vadd.f32 %v4202_v37, %v5185_v35  ;;  %v741_v28 = vpop.f32.mrb[27].mxu0  ;;  %4259 = vmatprep.subr.bf16.mxu0 %v4791_v4 }
 0x148   : > { %vm826_vm12 = vcmp.gt.f32.partialorder %v739_v41, 0.0  ;;  %v867_v42 = vmul.f32 %v5189_v38, %v739_v41  ;;  %v742_v43 = vadd.f32 %v5185_v35, %v741_v28  ;;  %v5402_v55 = vsel %vm1727_vm8, %v1782_v30, %v1786_v46 }
 0x149   : > { %v909_v7 = vsel %vm828_vm11, %v747_v32, %v869_v25  ;;  %vm829_vm13 = vcmp.gt.f32.partialorder %v750_v27, 0.0  ;;  %v870_v5 = vmul.f32 %v5189_v38, %v750_v27  ;;  %4239 = vmatprep.mubr.bf16.mxu0 %v5386_v23  ;;  %4354 = vmatpush3.bf16.msra.mxu1 %v4788_v62  ;;  %v1791_v56 = vshll.u32 %v5386_v23, 16  ;;  %v1128_v17 = vpop.permute.xlu0 %1127 }
 0x14a   : > { %v907_v48 = vsel %vm826_vm12, %v739_v41, %v867_v42  ;;  %vm827_vm14 = vcmp.gt.f32.partialorder %v742_v43, 0.0  ;;  %v868_v49 = vmul.f32 %v5189_v38, %v742_v43  ;;  %4355 = vmatprep.subr.bf16.mxu1 %v4790_v44  ;;  %4260 = vmatpush3.bf16.msra.mxu0 %v4791_v4  ;;  %v1191_v54 = vmul.f32 %v1098_v6, %v909_v7  ;;  %v1133_v37 = vpop.permute.xlu1 %1132 }
 0x14b   : > { %v910_v53 = vsel %vm829_vm13, %v750_v27, %v870_v5  ;;  %4261 = vmatprep.subr.bf16.mxu0 %v4793_v40  ;;  %v1189_v59 = vmul.f32 %v5313_v1, %v907_v48  ;;  %4335 = vmatprep.mubr.bf16.mxu1 %v5402_v55  ;;  %v1793_v36 = vrot.slane %v1791_v56, 1  ;;  %v1796_v9 = vshll.u32 %v5379_v20, 16 }
 0x14c   : > { %v1192_v60 = vmul.f32 %v1103_v13, %v910_v53  ;;  %v908_v34 = vsel %vm827_vm14, %v742_v43, %v868_v49  ;;  %v4205_v62 = vpop.f32.mrb[28].mxu0  ;;  %v1789_v1 = vshrl.u32 %v5386_v23, 16 }
 0x14d   : > { %v1190_v21 = vmul.f32 %v5317_v8, %v908_v34  ;;  %v763_v0 = vadd.f32 %v4205_v62, %v5185_v35  ;;  %v754_v4 = vpop.f32.mrb[29].mxu0  ;;  %4356 = vmatpush3.bf16.msra.mxu1 %v4790_v44  ;;  %v5422_v8 = vld [vmem:[%s5996_s4 + $0x1c0] sm:$0xff]   ;;  %v1798_v25 = vrot.slane %v1796_v9, 1 }
 0x14e   : > { %v5415_v11 = vpack.c.bf16 %v1192_v60, %v1191_v54  ;;  %v755_v6 = vadd.f32 %v5185_v35, %v754_v4  ;;  %v4206_v31 = vpop.f32.mrb[30].mxu0  ;;  %4357 = vmatprep.subr.bf16.mxu1 %v4792_v50  ;;  %4262 = vmatpush3.bf16.msra.mxu0 %v4793_v40  ;;  %v1794_v41 = vor.u32 %v1793_v36, %v1789_v1 }
 0x14f   : > { %v5424_v39 = vpack.c.bf16 %v1190_v21, %v1189_v59  ;;  %vm832_vm15 = vcmp.gt.f32.partialorder %v763_v0, 0.0  ;;  %v873_v13 = vmul.f32 %v5189_v38, %v763_v0  ;;  %v766_v14 = vadd.f32 %v4206_v31, %v5185_v35  ;;  %v757_v32 = vpop.f32.mrb[31].mxu0  ;;  %4279 = vmatprep.subr.bf16.mxu0 %v5408_v58  ;;  %v1138_v59 = vpop.permute.xlu0 %1137 }
 0x150   : > { %vm830_vm0 = vcmp.gt.f32.partialorder %v755_v6, 0.0  ;;  %v871_v18 = vmul.f32 %v5189_v38, %v755_v6  ;;  %v758_v19 = vadd.f32 %v5185_v35, %v757_v32  ;;  %v5436_v42 = vsel %vm1727_vm8, %v1794_v41, %v1798_v25 }
 0x151   : > { %v913_v29 = vsel %vm832_vm15, %v763_v0, %v873_v13  ;;  %vm833_vm2 = vcmp.gt.f32.partialorder %v766_v14, 0.0  ;;  %v874_v44 = vmul.f32 %v5189_v38, %v766_v14  ;;  %4240 = vmatmul.mubr.bf16.gmra.mrb[48].mxu0 %v5424_v39  ;;  %4358 = vmatpush3.bf16.msra.mxu1 %v4792_v50  ;;  %v1803_v43 = vshll.u32 %v5424_v39, 16 }
 0x152   : > { %v911_v27 = vsel %vm830_vm0, %v755_v6, %v871_v18  ;;  %vm831_vm3 = vcmp.gt.f32.partialorder %v758_v19, 0.0  ;;  %v872_v28 = vmul.f32 %v5189_v38, %v758_v19  ;;  %4375 = vmatprep.subr.bf16.mxu1 %v5422_v8  ;;  %v1195_v30 = vmul.f32 %v1118_v10, %v913_v29  ;;  %4336 = vmatmul.mubr.bf16.gmra.mrb[8].mxu1 %v5436_v42 }
 0x153   : > { %v914_v40 = vsel %vm833_vm2, %v766_v14, %v874_v44  ;;  %v1193_v7 = vmul.f32 %v5339_v24, %v911_v27  ;;  %v1805_v56 = vrot.slane %v1803_v43, 1  ;;  %v1808_v54 = vshll.u32 %v5415_v11, 16  ;;  %v1148_v41 = vpop.permute.xlu0 %1147 }
 0x154   : > { %v1196_v5 = vmul.f32 %v1123_v52, %v914_v40  ;;  %v912_v46 = vsel %vm831_vm3, %v758_v19, %v872_v28  ;;  %v4209_v48 = vpop.f32.mrb[32].mxu0  ;;  %v1801_v24 = vshrl.u32 %v5424_v39, 16  ;;  %v1143_v52 = vpop.permute.xlu1 %1142 }
 0x155   : > { %v1194_v49 = vmul.f32 %v5348_v22, %v912_v46  ;;  %v779_v50 = vadd.f32 %v4209_v48, %v5185_v35  ;;  %v770_v53 = vpop.f32.mrb[33].mxu0  ;;  %v1810_v1 = vrot.slane %v1808_v54, 1 }
 0x156   : > { %v5444_v60 = vpack.c.bf16 %v1196_v5, %v1195_v30  ;;  %v771_v10 = vadd.f32 %v5185_v35, %v770_v53  ;;  %v4210_v34 = vpop.f32.mrb[34].mxu0  ;;  %v1806_v9 = vor.u32 %v1805_v56, %v1801_v24 }
 0x157   : > { %v5448_v62 = vpack.c.bf16 %v1194_v49, %v1193_v7  ;;  %vm836_vm4 = vcmp.gt.f32.partialorder %v779_v50, 0.0  ;;  %v877_v22 = vmul.f32 %v5189_v38, %v779_v50  ;;  %v782_v21 = vadd.f32 %v4210_v34, %v5185_v35  ;;  %v773_v0 = vpop.f32.mrb[35].mxu0 }
 0x158   : > { %vm834_vm5 = vcmp.gt.f32.partialorder %v771_v10, 0.0  ;;  %v875_v4 = vmul.f32 %v5189_v38, %v771_v10  ;;  %v774_v36 = vadd.f32 %v5185_v35, %v773_v0  ;;  %v5458_v18 = vsel %vm1727_vm8, %v1806_v9, %v1810_v1  ;;  %v1153_v40 = vpop.permute.xlu1 %1152 }
 0x159   : > { %v917_v6 = vsel %vm836_vm4, %v779_v50, %v877_v22  ;;  %vm837_vm6 = vcmp.gt.f32.partialorder %v782_v21, 0.0  ;;  %v878_v31 = vmul.f32 %v5189_v38, %v782_v21  ;;  %4243 = vmatprep.mubr.bf16.mxu0 %v5448_v62  ;;  %v1815_v19 = vshll.u32 %v5448_v62, 16  ;;  %4339 = vmatprep.mubr.bf16.mxu1 %v5458_v18 }
 0x15a   : > { %v915_v13 = vsel %vm834_vm5, %v771_v10, %v875_v4  ;;  %vm835_vm7 = vcmp.gt.f32.partialorder %v774_v36, 0.0  ;;  %v876_v14 = vmul.f32 %v5189_v38, %v774_v36  ;;  %v1199_v29 = vmul.f32 %v1138_v59, %v917_v6 }
 0x15b   : > { %v918_v32 = vsel %vm837_vm6, %v782_v21, %v878_v31  ;;  %v1197_v44 = vmul.f32 %v1128_v17, %v915_v13  ;;  %v1817_v5 = vrot.slane %v1815_v19, 1  ;;  %v1820_v46 = vshll.u32 %v5444_v60, 16  ;;  %v1158_v21 = vpop.permute.xlu0 %1157 }
 0x15c   : > { %v1200_v25 = vmul.f32 %v1143_v52, %v918_v32  ;;  %v916_v27 = vsel %vm835_vm7, %v774_v36, %v876_v14  ;;  %v4213_v28 = vpop.f32.mrb[36].mxu0  ;;  %v1813_v53 = vshrl.u32 %v5448_v62, 16  ;;  %v1163_v9 = vpop.permute.xlu1 %1162 }
 0x15d   : > { %v1198_v43 = vmul.f32 %v1133_v37, %v916_v27  ;;  %v795_v30 = vadd.f32 %v4213_v28, %v5185_v35  ;;  %v786_v7 = vpop.f32.mrb[37].mxu0  ;;  %v1822_v22 = vrot.slane %v1820_v46, 1 }
 0x15e   : > { %v1222_v48 = vpack.c.bf16 %v1200_v25, %v1199_v29  ;;  %v787_v49 = vadd.f32 %v5185_v35, %v786_v7  ;;  %v4214_v50 = vpop.f32.mrb[38].mxu0  ;;  %v1818_v34 = vor.u32 %v1817_v5, %v1813_v53 }
 0x15f   : > { %v5466_v17 = vpack.c.bf16 %v1198_v43, %v1197_v44  ;;  %vm840_vm9 = vcmp.gt.f32.partialorder %v795_v30, 0.0  ;;  %v881_v56 = vmul.f32 %v5189_v38, %v795_v30  ;;  %v798_v54 = vadd.f32 %v4214_v50, %v5185_v35  ;;  %v789_v37 = vpop.f32.mrb[39].mxu0  ;;  %v4797_v43 = vld [vmem:[%s5996_s4 + $0x188] sm:$0xff]  }
 0x160   : > { %vm838_vm10 = vcmp.gt.f32.partialorder %v787_v49, 0.0  ;;  %v879_v59 = vmul.f32 %v5189_v38, %v787_v49  ;;  %v790_v10 = vadd.f32 %v5185_v35, %v789_v37  ;;  %v5478_v31 = vsel %vm1727_vm8, %v1818_v34, %v1822_v22  ;;  %v4798_v37 = vld [vmem:[%s5996_s4 + $0x1d0] sm:$0xff]   ;;  %v4803_v34 = vld [vmem:[%s5996_s4 + $0x1a0] sm:$0xff]   ;;  %v4804_v22 = vld [vmem:[%s5996_s4 + $0x1e8] sm:$0xff]  }
 0x161   : > { %v921_v24 = vsel %vm840_vm9, %v795_v30, %v881_v56  ;;  %vm841_vm11 = vcmp.gt.f32.partialorder %v798_v54, 0.0  ;;  %v882_v52 = vmul.f32 %v5189_v38, %v798_v54  ;;  %4244 = vmatmul.mubr.bf16.gmra.mrb[52].mxu0 %v5466_v17  ;;  %v2011_v36 = vshrl.u32 %v5466_v17, 16  ;;  %4340 = vmatmul.mubr.bf16.gmra.mrb[12].mxu1 %v5478_v31 }
 0x162   : > { %v919_v0 = vsel %vm838_vm10, %v787_v49, %v879_v59  ;;  %vm839_vm12 = vcmp.gt.f32.partialorder %v790_v10, 0.0  ;;  %v880_v4 = vmul.f32 %v5189_v38, %v790_v10  ;;  %4263 = vmatprep.mubr.bf16.mxu0 %v5209_v3  ;;  %v1203_v6 = vmul.f32 %v1158_v21, %v921_v24  ;;  %4359 = vmatprep.mubr.bf16.mxu1 %v5283_v26  ;;  %v4796_v49 = vld [vmem:[%s5996_s4 + $0x1c8] sm:$0xff]   ;;  %v4802_v24 = vld [vmem:[%s5996_s4 + $0x1e0] sm:$0xff]   ;;  %v4807_v21 = vld [vmem:[%s5996_s4 + $0x1b0] sm:$0xff]  }
 0x163   : > { %v922_v35 = vsel %vm841_vm11, %v798_v54, %v882_v52  ;;  %v2013_v1 = vshll.u32 %v5466_v17, 16  ;;  %v1201_v13 = vmul.f32 %v1148_v41, %v919_v0  ;;  %v2018_v19 = vshll.u32 %v1222_v48, 16  ;;  %v4805_v52 = vld [vmem:[%s5996_s4 + $0x1a8] sm:$0xff]   ;;  %v4806_v0 = vld [vmem:[%s5996_s4 + $0x1f0] sm:$0xff]  }
 0x164   : > { %v1204_v14 = vmul.f32 %v1163_v9, %v922_v35  ;;  %v920_v32 = vsel %vm839_vm12, %v790_v10, %v880_v4  ;;  %v2621_v44 = vrot.slane %v5466_v17, 1  ;;  %v2622_v25 = vrot.slane %v1222_v48, 1  ;;  %v4801_v10 = vld [vmem:[%s5996_s4 + $0x198] sm:$0xff]   ;;  %v4810_v9 = vld [vmem:[%s5996_s4 + $0x80] sm:$0xff]  }
 0x165   : > { %v1202_v29 = vmul.f32 %v1153_v40, %v920_v32  ;;  %v2015_v38 = vrot.slane %v2013_v1, 1  ;;  %v2020_v30 = vrot.slane %v2018_v19, 1  ;;  %v4809_v4 = vld [vmem:[%s5996_s4 + $0x1b8] sm:$0xff]   ;;  %v2410_v1 = vrot.slane %v5207_v2, 1 }
 0x166   : > { %v1224_v27 = vpack.c.bf16 %v1204_v14, %v1203_v6  ;;  %v5490_v7 = vsel %vm2408_vm1, %v2621_v44, %v2622_v25  ;;  %v4811_v6 = vld [vmem:[%s5996_s4 + $0x88] sm:$0xff]   ;;  %v4813_v35 = vld [vmem:[%s5996_s4 + $0x98] sm:$0xff]   ;;  %v2415_v2 = vrot.slane %v5261_v15, 1  ;;  %v2419_v19 = vrot.slane %v5299_v33, 1  ;;  %v4822_v33 = vld [vmem:[%s5996_s4 + $0x160] sm:$0xff]  }
 0x167   : > { %v5484_v28 = vpack.c.bf16 %v1202_v29, %v1201_v13  ;;  %v2016_v41 = vor.u32 %v2015_v38, %v2011_v36  ;;  %v4808_v36 = vld [vmem:[%s5996_s4 + $0x1f8] sm:$0xff]   ;;  %v2416_v13 = vrot.slane %v5257_v12, 1  ;;  %v4819_v14 = vld [vmem:[%s5996_s4 + $0x148] sm:$0xff]   ;;  %v2418_v12 = vrot.slane %v5306_v57, 1 }
 0x168   : > { %v2806_v5 = vrot.slane %v1224_v27, 1  ;;  %v2209_v46 = vshll.u32 %v1224_v27, 16  ;;  %v2421_v29 = vrot.slane %v5350_v47, 1  ;;  %v2422_v38 = vrot.slane %v5341_v61, 1  ;;  %v4821_v44 = vld [vmem:[%s5996_s4 + $0x158] sm:$0xff]  }
 0x169   : > { %4264 = vmatmul.mubr.bf16.vlgmr.msra.gmra.mrb[40].mxu0 %v5234_v45  ;;  %v5494_v26 = vsel %vm1727_vm8, %v2016_v41, %v2020_v30  ;;  %v2204_v40 = vshll.u32 %v5484_v28, 16  ;;  %v2805_v48 = vrot.slane %v5484_v28, 1  ;;  %v4799_v45 = vld [vmem:[%s5996_s4 + $0x190] sm:$0xff]   ;;  %v2202_v50 = vshrl.u32 %v5484_v28, 16  ;;  %4360 = vmatmul.mubr.bf16.vlgmr.msra.gmra.mrb[0].mxu1 %v5326_v16 }
 0x16a   : > { %4267 = vmatprep.mubr.bf16.mxu0 %v5261_v15  ;;  %4280 = vmatpush3.bf16.msra.mxu0 %v5408_v58  ;;  %v2211_v54 = vrot.slane %v2209_v46, 1  ;;  %v5612_v32 = vsel %vm2408_vm1, %v2415_v2, %v2416_v13  ;;  %v5626_v25 = vsel %vm2408_vm1, %v2418_v12, %v2419_v19  ;;  %v2423_v27 = vsel %vm2408_vm1, %v2421_v29, %v2422_v38  ;;  %v4831_v46 = vld [vmem:[%s5996_s4 + $0x228] sm:$0xff]  }
 0x16b   : > { %4281 = vmatprep.subr.bf16.mxu0 %v4797_v43  ;;  %v2206_v53 = vrot.slane %v2204_v40, 1  ;;  %v5508_v56 = vsel %vm2408_vm1, %v2805_v48, %v2806_v5  ;;  %4376 = vmatpush3.bf16.msra.mxu1 %v5422_v8  ;;  %v4800_v8 = vld [vmem:[%s5996_s4 + $0x1d8] sm:$0xff]   ;;  %v2425_v61 = vrot.slane %v5379_v20, 1  ;;  %v4824_v20 = vld [vmem:[%s5996_s4 + $0x170] sm:$0xff]   ;;  %v4830_v40 = vld [vmem:[%s5996_s4 + $0x220] sm:$0xff]  }
 0x16c   : > { %4363 = vmatprep.mubr.bf16.mxu1 %v5366_v63  ;;  %4377 = vmatprep.subr.bf16.mxu1 %v4796_v49  ;;  %v4832_v48 = vld [vmem:[%s5996_s4 + $0x230] sm:$0xff]  }
 0x16d   : > { %v2207_v58 = vor.u32 %v2206_v53, %v2202_v50  ;;  %v4835_v50 = vld [vmem:[%s5998_s6 + $0x8] sm:$0xff]   ;;  %v4836_v53 = vld [vmem:[%s5998_s6 + $0x10] sm:$0xff]  }
 0x16e   : > { %4282 = vmatpush3.bf16.msra.mxu0 %v4797_v43  ;;  %v4823_v43 = vld [vmem:[%s5996_s4 + $0x168] sm:$0xff]  }
 0x16f   : > { %4283 = vmatprep.subr.bf16.mxu0 %v4799_v45  ;;  %v5517_v59 = vsel %vm1727_vm8, %v2207_v58, %v2211_v54  ;;  %4378 = vmatpush3.bf16.msra.mxu1 %v4796_v49  ;;  %v4833_v49 = vld [vmem:[%s5996_s4 + $0x238] sm:$0xff]   ;;  %v4838_v54 = vld [vmem:[%s5998_s6 + $0x20] sm:$0xff]  }
 0x170   : > { %4379 = vmatprep.subr.bf16.mxu1 %v4798_v37  ;;  %v4837_v58 = vld [vmem:[%s5998_s6 + $0x18] sm:$0xff]  }
 0x171   : > { %4268 = vmatmul.mubr.bf16.gmra.mrb[44].mxu0 %v5306_v57  ;;  %4364 = vmatmul.mubr.bf16.gmra.mrb[4].mxu1 %v5402_v55 }
 0x172   : > { %4271 = vmatprep.mubr.bf16.mxu0 %v5350_v47  ;;  %4284 = vmatpush3.bf16.msra.mxu0 %v4799_v45  ;;  %v4834_v45 = vld [vmem:[%s5998_s6] sm:$0xff]  }
 0x173   : > { %4285 = vmatprep.subr.bf16.mxu0 %v4801_v10  ;;  %4380 = vmatpush3.bf16.msra.mxu1 %v4798_v37  ;;  %v4841_v37 = vld [vmem:[%s5998_s6 + $0x38] sm:$0xff]  }
 0x174   : > { %4367 = vmatprep.mubr.bf16.mxu1 %v5436_v42  ;;  %4381 = vmatprep.subr.bf16.mxu1 %v4800_v8 }
 0x176   : > { %4286 = vmatpush3.bf16.msra.mxu0 %v4801_v10 }
 0x177   : > { %4287 = vmatprep.subr.bf16.mxu0 %v4803_v34  ;;  %4382 = vmatpush3.bf16.msra.mxu1 %v4800_v8 }
 0x178   : > { %4383 = vmatprep.subr.bf16.mxu1 %v4802_v24 }
 0x179   : > { %4272 = vmatmul.mubr.bf16.gmra.mrb[48].mxu0 %v5386_v23  ;;  %4368 = vmatmul.mubr.bf16.gmra.mrb[8].mxu1 %v5458_v18 }
 0x17a   : > { %4275 = vmatprep.mubr.bf16.mxu0 %v5424_v39  ;;  %4288 = vmatpush3.bf16.msra.mxu0 %v4803_v34 }
 0x17b   : > { %4289 = vmatprep.subr.bf16.mxu0 %v4805_v52  ;;  %4384 = vmatpush3.bf16.msra.mxu1 %v4802_v24 }
 0x17c   : > { %4371 = vmatprep.mubr.bf16.mxu1 %v5478_v31  ;;  %4385 = vmatprep.subr.bf16.mxu1 %v4804_v22 }
 0x17e   : > { %4290 = vmatpush3.bf16.msra.mxu0 %v4805_v52 }
 0x17f   : > { %4291 = vmatprep.subr.bf16.mxu0 %v4807_v21  ;;  %4386 = vmatpush3.bf16.msra.mxu1 %v4804_v22 }
 0x180   : > { %4387 = vmatprep.subr.bf16.mxu1 %v4806_v0 }
 0x181   : > { %4276 = vmatmul.mubr.bf16.gmra.mrb[52].mxu0 %v5448_v62  ;;  %4372 = vmatmul.mubr.bf16.gmra.mrb[12].mxu1 %v5494_v26 }
 0x182   : > { %4295 = vmatprep.mubr.bf16.mxu0 %v5261_v15  ;;  %4292 = vmatpush3.bf16.msra.mxu0 %v4807_v21  ;;  %v4820_v15 = vld [vmem:[%s5996_s4 + $0x150] sm:$0xff]  }
 0x183   : > { %4293 = vmatprep.subr.bf16.mxu0 %v4809_v4  ;;  %4388 = vmatpush3.bf16.msra.mxu1 %v4806_v0 }
 0x184   : > { %4391 = vmatprep.mubr.bf16.mxu1 %v5326_v16  ;;  %4389 = vmatprep.subr.bf16.mxu1 %v4808_v36  ;;  %v4812_v16 = vld [vmem:[%s5996_s4 + $0x90] sm:$0xff]  }
 0x186   : > { %4294 = vmatpush3.bf16.msra.mxu0 %v4809_v4 }
 0x187   : > { %4390 = vmatpush3.bf16.msra.mxu1 %v4808_v36  ;;  %4503 = vmatprep.subr.bf16.mxu0 %v4834_v45 }
 0x188   : > { %4407 = vmatprep.subr.bf16.mxu1 %v4810_v9 }
 0x189   : > { %4296 = vmatmul.mubr.bf16.vlgmr.msra.gmra.mrb[40].mxu0 %v5306_v57  ;;  %v2424_v57 = vrot.slane %v5386_v23, 1 }
 0x18a   : > { %4299 = vmatprep.mubr.bf16.mxu0 %v5350_v47  ;;  %4392 = vmatmul.mubr.bf16.vlgmr.msra.gmra.mrb[0].mxu1 %v5366_v63  ;;  %v4814_v63 = vld [vmem:[%s5996_s4 + $0xa0] sm:$0xff]   ;;  %v2427_v47 = vrot.slane %v5424_v39, 1 }
 0x18b   : > { %4408 = vmatpush3.bf16.msra.mxu1 %v4810_v9  ;;  %4395 = vmatprep.mubr.bf16.mxu1 %v5402_v55  ;;  %v4815_v55 = vld [vmem:[%s5996_s4 + $0xa8] sm:$0xff]   ;;  %v2426_v41 = vsel %vm2408_vm1, %v2424_v57, %v2425_v61 }
 0x18c   : > { %4409 = vmatprep.subr.bf16.mxu1 %v4811_v6  ;;  %4504 = vmatpush3.bf16.msra.mxu0 %v4834_v45 }
 0x18d   : > { %4505 = vmatprep.subr.bf16.mxu0 %v4835_v50 }
 0x18f   : > { %4410 = vmatpush3.bf16.msra.mxu1 %v4811_v6 }
 0x190   : > { %4411 = vmatprep.subr.bf16.mxu1 %v4812_v16  ;;  %4506 = vmatpush3.bf16.msra.mxu0 %v4835_v50 }
 0x191   : > { %4300 = vmatmul.mubr.bf16.gmra.mrb[44].mxu0 %v5386_v23  ;;  %v2430_v23 = vrot.slane %v5448_v62, 1  ;;  %4507 = vmatprep.subr.bf16.mxu0 %v4836_v53 }
 0x192   : > { %4303 = vmatprep.mubr.bf16.mxu0 %v5424_v39  ;;  %4396 = vmatmul.mubr.bf16.gmra.mrb[4].mxu1 %v5436_v42  ;;  %v4816_v42 = vld [vmem:[%s5996_s4 + $0xb0] sm:$0xff]   ;;  %v4825_v39 = vld [vmem:[%s5996_s4 + $0x178] sm:$0xff]  }
 0x193   : > { %4412 = vmatpush3.bf16.msra.mxu1 %v4812_v16  ;;  %4399 = vmatprep.mubr.bf16.mxu1 %v5458_v18  ;;  %v2409_v18 = vrot.slane %v5209_v3, 1  ;;  %v4818_v3 = vld [vmem:[%s5996_s4 + $0x140] sm:$0xff]  }
 0x194   : > { %4413 = vmatprep.subr.bf16.mxu1 %v4813_v35  ;;  %4508 = vmatpush3.bf16.msra.mxu0 %v4836_v53 }
 0x195   : > { %4509 = vmatprep.subr.bf16.mxu0 %v4837_v58 }
 0x197   : > { %4414 = vmatpush3.bf16.msra.mxu1 %v4813_v35 }
 0x198   : > { %4415 = vmatprep.subr.bf16.mxu1 %v4814_v63  ;;  %4510 = vmatpush3.bf16.msra.mxu0 %v4837_v58 }
 0x199   : > { %4304 = vmatmul.mubr.bf16.gmra.mrb[48].mxu0 %v5448_v62  ;;  %v4829_v62 = vld [vmem:[%s5996_s4 + $0x218] sm:$0xff]   ;;  %4511 = vmatprep.subr.bf16.mxu0 %v4838_v54 }
 0x19a   : > { %4307 = vmatprep.mubr.bf16.mxu0 %v5466_v17  ;;  %4400 = vmatmul.mubr.bf16.gmra.mrb[8].mxu1 %v5478_v31  ;;  %v4817_v17 = vld [vmem:[%s5996_s4 + $0xb8] sm:$0xff]   ;;  %v2411_v31 = vsel %vm2408_vm1, %v2409_v18, %v2410_v1 }
 0x19b   : > { %4416 = vmatpush3.bf16.msra.mxu1 %v4814_v63  ;;  %4403 = vmatprep.mubr.bf16.mxu1 %v5494_v26  ;;  %v4826_v26 = vld [vmem:[%s5996_s4 + $0x200] sm:$0xff]  }
 0x19c   : > { %4417 = vmatprep.subr.bf16.mxu1 %v4815_v55  ;;  %4512 = vmatpush3.bf16.msra.mxu0 %v4838_v54 }
 0x19f   : > { %4418 = vmatpush3.bf16.msra.mxu1 %v4815_v55 }
 0x1a0   : > { %4419 = vmatprep.subr.bf16.mxu1 %v4816_v42 }
 0x1a1   : > { %4308 = vmatmul.mubr.bf16.gmra.mrb[52].mxu0 %v5484_v28  ;;  %v2428_v28 = vrot.slane %v5415_v11, 1  ;;  %v2431_v11 = vrot.slane %v5444_v60, 1  ;;  %v4827_v60 = vld [vmem:[%s5996_s4 + $0x208] sm:$0xff]  }
 0x1a2   : > { %4404 = vmatmul.mubr.bf16.gmra.mrb[12].mxu1 %v5517_v59 }
 0x1a3   : > { %4420 = vmatpush3.bf16.msra.mxu1 %v4816_v42  ;;  %4423 = vmatprep.mubr.bf16.mxu1 %v2411_v31  ;;  %v2429_v30 = vsel %vm2408_vm1, %v2427_v47, %v2428_v28  ;;  %v2432_v5 = vsel %vm2408_vm1, %v2430_v23, %v2431_v11  ;;  %v5724_v42 = vld [vmem:[%s5997_s5] ss:$0 sm:$0xff] }
 0x1a4   : > { %4421 = vmatprep.subr.bf16.mxu1 %v4817_v17 }
 0x1a7   : > { %4422 = vmatpush3.bf16.msra.mxu1 %v4817_v17  ;;  %v5726_v17 = vstv %s3727_s17 }
 0x1a8   : > { %4439 = vmatprep.subr.bf16.mxu1 %v4818_v3 }
 0x1aa   : > { %4424 = vmatmul.mubr.bf16.vlgmr.msra.gmra.mrb[0].mxu1 %v5293_v51 }
 0x1ab   : > { %4440 = vmatpush3.bf16.msra.mxu1 %v4818_v3  ;;  %4427 = vmatprep.mubr.bf16.mxu1 %v5612_v32 }
 0x1ac   : > { %4441 = vmatprep.subr.bf16.mxu1 %v4819_v14 }
 0x1af   : > { %4442 = vmatpush3.bf16.msra.mxu1 %v4819_v14 }
 0x1b0   : > { %4443 = vmatprep.subr.bf16.mxu1 %v4820_v15 }
 0x1b2   : > { %4428 = vmatmul.mubr.bf16.gmra.mrb[4].mxu1 %v5626_v25 }
 0x1b3   : > { %4444 = vmatpush3.bf16.msra.mxu1 %v4820_v15  ;;  %4431 = vmatprep.mubr.bf16.mxu1 %v2423_v27 }
 0x1b4   : > { %4445 = vmatprep.subr.bf16.mxu1 %v4821_v44 }
 0x1b7   : > { %4446 = vmatpush3.bf16.msra.mxu1 %v4821_v44 }
 0x1b8   : > { %4447 = vmatprep.subr.bf16.mxu1 %v4822_v33 }
 0x1ba   : > { %4432 = vmatmul.mubr.bf16.gmra.mrb[8].mxu1 %v2426_v41 }
 0x1bb   : > { %4448 = vmatpush3.bf16.msra.mxu1 %v4822_v33  ;;  %4435 = vmatprep.mubr.bf16.mxu1 %v2429_v30 }
 0x1bc   : > { %4449 = vmatprep.subr.bf16.mxu1 %v4823_v43 }
 0x1bf   : > { %4450 = vmatpush3.bf16.msra.mxu1 %v4823_v43 }
 0x1c0   : > { %4451 = vmatprep.subr.bf16.mxu1 %v4824_v20 }
 0x1c2   : > { %4436 = vmatmul.mubr.bf16.gmra.mrb[12].mxu1 %v2432_v5 }
 0x1c3   : > { %4452 = vmatpush3.bf16.msra.mxu1 %v4824_v20  ;;  %4455 = vmatprep.mubr.bf16.mxu1 %v5293_v51  ;;  %v4828_v51 = vld [vmem:[%s5996_s4 + $0x210] sm:$0xff]  }
 0x1c4   : > { %4453 = vmatprep.subr.bf16.mxu1 %v4825_v39 }
 0x1c7   : > { %4454 = vmatpush3.bf16.msra.mxu1 %v4825_v39 }
 0x1c8   : > { %4471 = vmatprep.subr.bf16.mxu1 %v4826_v26 }
 0x1ca   : > { %4456 = vmatmul.mubr.bf16.vlgmr.msra.gmra.mrb[0].mxu1 %v5612_v32 }
 0x1cb   : > { %4472 = vmatpush3.bf16.msra.mxu1 %v4826_v26  ;;  %4459 = vmatprep.mubr.bf16.mxu1 %v5626_v25 }
 0x1cc   : > { %4473 = vmatprep.subr.bf16.mxu1 %v4827_v60 }
 0x1cf   : > { %4474 = vmatpush3.bf16.msra.mxu1 %v4827_v60 }
 0x1d0   : > { %4475 = vmatprep.subr.bf16.mxu1 %v4828_v51 }
 0x1d2   : > { %4460 = vmatmul.mubr.bf16.gmra.mrb[4].mxu1 %v2423_v27 }
 0x1d3   : > { %4476 = vmatpush3.bf16.msra.mxu1 %v4828_v51  ;;  %4463 = vmatprep.mubr.bf16.mxu1 %v2426_v41 }
 0x1d4   : > { %4477 = vmatprep.subr.bf16.mxu1 %v4829_v62 }
 0x1d7   : > { %4478 = vmatpush3.bf16.msra.mxu1 %v4829_v62 }
 0x1d8   : > { %4479 = vmatprep.subr.bf16.mxu1 %v4830_v40 }
 0x1da   : > { %4464 = vmatmul.mubr.bf16.gmra.mrb[8].mxu1 %v2429_v30 }
 0x1db   : > { %4480 = vmatpush3.bf16.msra.mxu1 %v4830_v40  ;;  %4467 = vmatprep.mubr.bf16.mxu1 %v2432_v5 }
 0x1dc   : > { %4481 = vmatprep.subr.bf16.mxu1 %v4831_v46 }
 0x1df   : > { %4482 = vmatpush3.bf16.msra.mxu1 %v4831_v46 }
 0x1e0   : > { %4483 = vmatprep.subr.bf16.mxu1 %v4832_v48 }
 0x1e2   : > { %4468 = vmatmul.mubr.bf16.gmra.mrb[12].mxu1 %v5490_v7 }
 0x1e3   : > { %4484 = vmatpush3.bf16.msra.mxu1 %v4832_v48  ;;  %4487 = vmatprep.mubr.bf16.mxu1 %v5612_v32 }
 0x1e4   : > { %4485 = vmatprep.subr.bf16.mxu1 %v4833_v49 }
 0x1e7   : > { %4486 = vmatpush3.bf16.msra.mxu1 %v4833_v49 }
 0x1e8   : > { %4535 = vmatprep.subr.bf16.mxu1 %v4834_v45 }
 0x1ea   : > { %4488 = vmatmul.mubr.bf16.vlgmr.msra.gmra.mrb[0].mxu1 %v5626_v25 }
 0x1eb   : > { %4491 = vmatprep.mubr.bf16.mxu1 %v2423_v27  ;;  %4543 = vmatpush3.bf16.msra.mxu1 %v4834_v45 }
 0x1ec   : > { %4536 = vmatprep.subr.bf16.mxu1 %v4835_v50 }
 0x1ef   : > { %4544 = vmatpush3.bf16.msra.mxu1 %v4835_v50 }
 0x1f0   : > { %4537 = vmatprep.subr.bf16.mxu1 %v4836_v53 }
 0x1f2   : > { %4492 = vmatmul.mubr.bf16.gmra.mrb[4].mxu1 %v2426_v41 }
 0x1f3   : > { %4495 = vmatprep.mubr.bf16.mxu1 %v2429_v30  ;;  %4545 = vmatpush3.bf16.msra.mxu1 %v4836_v53 }
 0x1f4   : > { %4538 = vmatprep.subr.bf16.mxu1 %v4837_v58 }
 0x1f7   : > { %4546 = vmatpush3.bf16.msra.mxu1 %v4837_v58 }
 0x1f8   : > { %4539 = vmatprep.subr.bf16.mxu1 %v4838_v54 }
 0x1fa   : > { %4496 = vmatmul.mubr.bf16.gmra.mrb[8].mxu1 %v2432_v5 }
 0x1fb   : > { %4499 = vmatprep.mubr.bf16.mxu1 %v5490_v7  ;;  %4547 = vmatpush3.bf16.msra.mxu1 %v4838_v54  ;;  %v4839_v7 = vld [vmem:[%s5998_s6 + $0x28] sm:$0xff]  }
 0x1fc   : > { %4513 = vmatprep.subr.bf16.mxu0 %v4839_v7  ;;  %4540 = vmatprep.subr.bf16.mxu1 %v4839_v7 }
 0x1fd   : > { %4514 = vmatpush3.bf16.msra.mxu0 %v4839_v7 }
 0x1ff   : > { %4548 = vmatpush3.bf16.msra.mxu1 %v4839_v7 }
 0x202   : > { %4500 = vmatmul.mubr.bf16.gmra.mrb[12].mxu1 %v5508_v56  ;;  %v4840_v56 = vld [vmem:[%s5998_s6 + $0x30] sm:$0xff]  }
 0x203   : > { %4515 = vmatprep.subr.bf16.mxu0 %v4840_v56  ;;  %4541 = vmatprep.subr.bf16.mxu1 %v4840_v56 }
 0x204   : > { %4516 = vmatpush3.bf16.msra.mxu0 %v4840_v56  ;;  %4549 = vmatpush3.bf16.msra.mxu1 %v4840_v56 }
 0x205   : > { %4517 = vmatprep.subr.bf16.mxu0 %v4841_v37  ;;  %4542 = vmatprep.subr.bf16.mxu1 %v4841_v37 }
 0x208   : > { %4518 = vmatpush3.bf16.msra.mxu0 %v4841_v37  ;;  %4550 = vmatpush3.bf16.msra.mxu1 %v4841_v37 }
 0x25c   : > { %v4297_v59 = vpop.f32.mrb[40].mxu0 }
 0x25d   : > { %v1648_v10 = vpop.f32.mrb[41].mxu0 }
 0x25e   : > { %v4298_v8 = vpop.f32.mrb[42].mxu0 }
 0x25f   : > { %v1651_v34 = vpop.f32.mrb[43].mxu0 }
 0x264   : > { %v4301_v24 = vpop.f32.mrb[44].mxu0 }
 0x265   : > { %v1664_v52 = vpop.f32.mrb[45].mxu0 }
 0x266   : > { %v4302_v22 = vpop.f32.mrb[46].mxu0 }
 0x267   : > { %v1667_v21 = vpop.f32.mrb[47].mxu0 }
 0x26c   : > { %v4305_v0 = vpop.f32.mrb[48].mxu0 }
 0x26d   : > { %v5707_v4 = vpop.f32.mrb[49].mxu0 }
 0x26e   : > { %v5709_v36 = vpop.f32.mrb[50].mxu0 }
 0x26f   : > { %v5711_v9 = vpop.f32.mrb[51].mxu0 }
 0x274   : > { %v5713_v6 = vpop.f32.mrb[52].mxu0 }
 0x275   : > { %v5715_v16 = vpop.f32.mrb[53].mxu0 }
 0x276   : > { %v5717_v35 = vpop.f32.mrb[54].mxu0 }
 0x277   : > { %v5719_v63 = vpop.f32.mrb[55].mxu0 }
 0x2bd   : > { %v4489_v55 = vpop.f32.mrb[0].mxu1 }
 0x2be   : > { %v4551_v18 = vadd.f32 %v4489_v55, %v4297_v59  ;;  %v2908_v1 = vpop.f32.mrb[1].mxu1 }
 0x2bf   : > { %v4552_v31 = vadd.f32 %v2908_v1, %v1648_v10  ;;  %v4490_v3 = vpop.f32.mrb[2].mxu1 }
 0x2c0   : > { %v2996_v2 = vadd.f32 %v4551_v18, %v5724_v42  ;;  %v4553_v13 = vadd.f32 %v4490_v3, %v4298_v8  ;;  %v2911_v14 = vpop.f32.mrb[3].mxu1 }
 0x2c1   : > { %v2994_v32 = vadd.f32 %v4552_v31, %v5724_v42  ;;  %v4554_v15 = vadd.f32 %v2911_v14, %v1651_v34 }
 0x2c2   : > { %v3029_v12 = vmul.f32 %v5726_v17, %v2996_v2  ;;  %v2997_v19 = vadd.f32 %v4553_v13, %v5724_v42  ;;  %vm3012_vm8 = vcmp.gt.f32.partialorder %v2996_v2, 0.0 }
 0x2c3   : > { %v3027_v29 = vmul.f32 %v5726_v17, %v2994_v32  ;;  %v2995_v38 = vadd.f32 %v4554_v15, %v5724_v42  ;;  %vm3010_vm1 = vcmp.gt.f32.partialorder %v2994_v32, 0.0 }
 0x2c4   : > { %vm3013_vm13 = vcmp.gt.f32.partialorder %v2997_v19, 0.0  ;;  %v3030_v44 = vmul.f32 %v5726_v17, %v2997_v19  ;;  %v3045_v33 = vsel %vm3012_vm8, %v2996_v2, %v3029_v12  ;;  %vm3263_vm8 = vsmask.f32 3328 }
 0x2c5   : > { %vm3011_vm14 = vcmp.gt.f32.partialorder %v2995_v38, 0.0  ;;  %v3028_v25 = vmul.f32 %v5726_v17, %v2995_v38  ;;  %v4493_v27 = vpop.f32.mrb[4].mxu1  ;;  %v3043_v30 = vsel %vm3010_vm1, %v2994_v32, %v3027_v29  ;;  %vm3264_vm1 = vsmask.f32 7440 }
 0x2c6   : > { %v3046_v57 = vsel %vm3013_vm13, %v2997_v19, %v3030_v44  ;;  %v4555_v61 = vadd.f32 %v4493_v27, %v4301_v24  ;;  %v2924_v47 = vpop.f32.mrb[5].mxu1  ;;  %vm5791_vm13 = vmor %vm3263_vm8, %vm3264_vm1 }
 0x2c7   : > { %v3060_v28 = vpack.c.bf16 %v3046_v57, %v3045_v33  ;;  %v4556_v43 = vadd.f32 %v2924_v47, %v1664_v52  ;;  %v4494_v41 = vpop.f32.mrb[6].mxu1  ;;  %v3044_v20 = vsel %vm3011_vm14, %v2995_v38, %v3028_v25 }
 0x2c8   : > { %v3000_v23 = vadd.f32 %v4555_v61, %v5724_v42  ;;  %v4557_v11 = vadd.f32 %v4494_v41, %v4302_v22  ;;  %v2927_v39 = vpop.f32.mrb[7].mxu1  ;;  %v3059_v5 = vpack.c.bf16 %v3044_v20, %v3043_v30 }
 0x2c9   : > { %v2998_v26 = vadd.f32 %v4556_v43, %v5724_v42  ;;  %v4558_v60 = vadd.f32 %v2927_v39, %v1667_v21 }
 0x2ca   : > { %v3033_v51 = vmul.f32 %v5726_v17, %v3000_v23  ;;  %v3001_v62 = vadd.f32 %v4557_v11, %v5724_v42  ;;  %4519 = vmatprep.mubr.bf16.mxu0 %v3059_v5  ;;  %vm3016_vm15 = vcmp.gt.f32.partialorder %v3000_v23, 0.0  ;;  %v3944_v5 = vld [vmem:[%s5031_s24 + $0x24] sm:$0xf] }
 0x2cb   : > { %v3031_v40 = vmul.f32 %v5726_v17, %v2998_v26  ;;  %v2999_v46 = vadd.f32 %v4558_v60, %v5724_v42  ;;  %4520 = vmatmul.mubr.bf16.vlgmr.msra.gmra.mrb[56].mxu0 %v3060_v28  ;;  %vm3014_vm0 = vcmp.gt.f32.partialorder %v2998_v26, 0.0 }
 0x2cc   : > { %vm3017_vm2 = vcmp.gt.f32.partialorder %v3001_v62, 0.0  ;;  %v3034_v48 = vmul.f32 %v5726_v17, %v3001_v62  ;;  %v3049_v58 = vsel %vm3016_vm15, %v3000_v23, %v3033_v51  ;;  %v3940_v23 = vld [vmem:[%s5031_s24 + $0x10] sm:$0xf] }
 0x2cd   : > { %vm3015_vm3 = vcmp.gt.f32.partialorder %v2999_v46, 0.0  ;;  %v3032_v49 = vmul.f32 %v5726_v17, %v2999_v46  ;;  %v4497_v45 = vpop.f32.mrb[8].mxu1  ;;  %v3047_v37 = vsel %vm3014_vm0, %v2998_v26, %v3031_v40  ;;  %v3267_v26 = vshrl.u32 %v3940_v23, 16 }
 0x2ce   : > { %v4559_v50 = vadd.f32 %v4497_v45, %v4305_v0  ;;  %v2940_v53 = vpop.f32.mrb[9].mxu1  ;;  %v3050_v54 = vsel %vm3017_vm2, %v3001_v62, %v3034_v48  ;;  %v3270_v60 = vshll.u32 %v3940_v23, 16  ;;  %v3300_v40 = vshll.u32 %v3944_v5, 16 }
 0x2cf   : > { %v4560_v7 = vadd.f32 %v2940_v53, %v5707_v4  ;;  %v4498_v56 = vpop.f32.mrb[10].mxu1  ;;  %v3048_v59 = vsel %vm3015_vm3, %v2999_v46, %v3032_v49  ;;  %v3062_v10 = vpack.c.bf16 %v3050_v54, %v3049_v58  ;;  %v3304_v46 = vshrl.u32 %v3944_v5, 16  ;;  %v3949_v53 = vld [vmem:[%s5031_s24 + $0x40] sm:$0xf] }
 0x2d0   : > { %v3004_v8 = vadd.f32 %v4559_v50, %v5724_v42  ;;  %v4561_v34 = vadd.f32 %v4498_v56, %v5709_v36  ;;  %v2943_v24 = vpop.f32.mrb[11].mxu1  ;;  %v3061_v52 = vpack.c.bf16 %v3048_v59, %v3047_v37  ;;  %v3269_v48 = vrot.slane %v3267_v26, 4  ;;  %v3946_v56 = vld [vmem:[%s5031_s24 + $0x30] sm:$0xf] }
 0x2d1   : > { %v3002_v22 = vadd.f32 %v4560_v7, %v5724_v42  ;;  %v4562_v21 = vadd.f32 %v2943_v24, %v5711_v9  ;;  %v3272_v49 = vrot.slane %v3270_v60, 5  ;;  %v5772_v54 = vrot.slane %v3300_v40, 5  ;;  %v3950_v7 = vld [vmem:[%s5031_s24 + $0x44] sm:$0xf]  ;;  %v3945_v24 = vld [vmem:[%s5031_s24 + $0x28] sm:$0x1] }
 0x2d2   : > { %v3037_v0 = vmul.f32 %v5726_v17, %v3004_v8  ;;  %v3005_v55 = vadd.f32 %v4561_v34, %v5724_v42  ;;  %4523 = vmatprep.mubr.bf16.mxu0 %v3061_v52  ;;  %vm3020_vm4 = vcmp.gt.f32.partialorder %v3004_v8, 0.0  ;;  %v3947_v34 = vld [vmem:[%s5031_s24 + $0x34] sm:$0xf]  ;;  %v3339_v52 = vshrl.u32 %v3949_v53, 16 }
 0x2d3   : > { %v3035_v4 = vmul.f32 %v5726_v17, %v3002_v22  ;;  %v3003_v18 = vadd.f32 %v4562_v21, %v5724_v42  ;;  %4524 = vmatmul.mubr.bf16.gmra.mrb[60].mxu0 %v3062_v10  ;;  %vm3018_vm5 = vcmp.gt.f32.partialorder %v3002_v22, 0.0  ;;  %v3273_v37 = vor.u32 %v3272_v49, %v3269_v48 }
 0x2d4   : > { %vm3021_vm6 = vcmp.gt.f32.partialorder %v3005_v55, 0.0  ;;  %v3038_v36 = vmul.f32 %v5726_v17, %v3005_v55  ;;  %v3053_v2 = vsel %vm3020_vm4, %v3004_v8, %v3037_v0  ;;  %v3306_v10 = vrot.slane %v3304_v46, 4 }
 0x2d5   : > { %vm3019_vm7 = vcmp.gt.f32.partialorder %v3003_v18, 0.0  ;;  %v3036_v1 = vmul.f32 %v5726_v17, %v3003_v18  ;;  %v4501_v31 = vpop.f32.mrb[12].mxu1  ;;  %v3051_v15 = vsel %vm3018_vm5, %v3002_v22, %v3035_v4  ;;  %v3342_v22 = vshll.u32 %v3949_v53, 16  ;;  %v3957_v53 = vld [vmem:[%s5031_s24 + $0x68] sm:$0x1] }
 0x2d6   : > { %v4563_v9 = vadd.f32 %v4501_v31, %v5713_v6  ;;  %v2956_v3 = vpop.f32.mrb[13].mxu1  ;;  %v3054_v13 = vsel %vm3021_vm6, %v3005_v55, %v3038_v36  ;;  %v3348_v21 = vshll.u32 %v3950_v7, 16  ;;  %v3352_v0 = vshrl.u32 %v3950_v7, 16 }
 0x2d7   : > { %v4564_v14 = vadd.f32 %v2956_v3, %v5715_v16  ;;  %v4502_v32 = vpop.f32.mrb[14].mxu1  ;;  %v3052_v12 = vsel %vm3019_vm7, %v3003_v18, %v3036_v1  ;;  %v3064_v19 = vpack.c.bf16 %v3054_v13, %v3053_v2  ;;  %v3315_v55 = vshrl.u32 %v3946_v56, 16  ;;  %v3955_v18 = vld [vmem:[%s5031_s24 + $0x60] sm:$0xf]  ;;  %v3942_v13 = vld [vmem:[%s5031_s24 + $0x18] sm:$0x1] }
 0x2d8   : > { %v3008_v29 = vadd.f32 %v4563_v9, %v5724_v42  ;;  %v4565_v38 = vadd.f32 %v4502_v32, %v5717_v35  ;;  %v2959_v44 = vpop.f32.mrb[15].mxu1  ;;  %v3063_v25 = vpack.c.bf16 %v3052_v12, %v3051_v15  ;;  %v3318_v4 = vshll.u32 %v3946_v56, 16  ;;  %v3956_v32 = vld [vmem:[%s5031_s24 + $0x64] sm:$0xf] }
 0x2d9   : > { %v3006_v27 = vadd.f32 %v4564_v14, %v5724_v42  ;;  %v4566_v33 = vadd.f32 %v2959_v44, %v5719_v63  ;;  %v3324_v1 = vshll.u32 %v3947_v34, 16  ;;  %v3328_v31 = vshrl.u32 %v3947_v34, 16  ;;  %v3952_v44 = vld [vmem:[%s5031_s24 + $0x50] sm:$0xf] }
 0x2da   : > { %v3041_v6 = vmul.f32 %v5726_v17, %v3008_v29  ;;  %v3009_v57 = vadd.f32 %v4565_v38, %v5724_v42  ;;  %4527 = vmatprep.mubr.bf16.mxu0 %v3063_v25  ;;  %vm3024_vm9 = vcmp.gt.f32.partialorder %v3008_v29, 0.0  ;;  %v5783_v9 = vrot.slane %v3273_v37, 4 }
 0x2db   : > { %v3039_v16 = vmul.f32 %v5726_v17, %v3006_v27  ;;  %v3007_v61 = vadd.f32 %v4566_v33, %v5724_v42  ;;  %4528 = vmatmul.mubr.bf16.gmra.mrb[64].mxu0 %v3064_v19  ;;  %vm3022_vm10 = vcmp.gt.f32.partialorder %v3006_v27, 0.0  ;;  %v3943_v42 = vld [vmem:[%s5031_s24 + $0x20] sm:$0xf]  ;;  %v3307_v3 = vor.u32 %v3306_v10, %v5772_v54 }
 0x2dc   : > { %vm3025_vm11 = vcmp.gt.f32.partialorder %v3009_v57, 0.0  ;;  %v3042_v35 = vmul.f32 %v5726_v17, %v3009_v57  ;;  %v3057_v47 = vsel %vm3024_vm9, %v3008_v29, %v3041_v6  ;;  %v3291_v11 = vshrl.u32 %v3943_v42, 16 }
 0x2dd   : > { %vm3023_vm12 = vcmp.gt.f32.partialorder %v3007_v61, 0.0  ;;  %v3040_v63 = vmul.f32 %v5726_v17, %v3007_v61  ;;  %v3055_v41 = vsel %vm3022_vm10, %v3006_v27, %v3039_v16  ;;  %v3294_v39 = vshll.u32 %v3943_v42, 16  ;;  %v3941_v17 = vld [vmem:[%s5031_s24 + $0x14] sm:$0xf]  ;;  %v3951_v16 = vld [vmem:[%s5031_s24 + $0x48] sm:$0x1] }
 0x2de   : > { %v3058_v28 = vsel %vm3025_vm11, %v3009_v57, %v3042_v35  ;;  %v3293_v51 = vrot.slane %v3291_v11, 4  ;;  %v3276_v45 = vshll.u32 %v3941_v17, 16  ;;  %v3280_v50 = vshrl.u32 %v3941_v17, 16  ;;  %v3953_v17 = vld [vmem:[%s5031_s24 + $0x54] sm:$0xf] }
 0x2df   : > { %v3066_v43 = vpack.c.bf16 %v3058_v28, %v3057_v47  ;;  %v3056_v30 = vsel %vm3023_vm12, %v3007_v61, %v3040_v63  ;;  %v3296_v62 = vrot.slane %v3294_v39, 5  ;;  %v3310_v2 = vshll.u32 %v3945_v24, 16 }
 0x2e0   : > { %v3065_v20 = vpack.c.bf16 %v3056_v30, %v3055_v41  ;;  %v5776_v59 = vrot.slane %v3276_v45, 5  ;;  %v3282_v8 = vrot.slane %v3280_v50, 4  ;;  %v3341_v12 = vrot.slane %v3339_v52, 4  ;;  %v3948_v41 = vld [vmem:[%s5031_s24 + $0x38] sm:$0x1] }
 0x2e1   : > { %v3297_v58 = vor.u32 %v3296_v62, %v3293_v51  ;;  %v3344_v19 = vrot.slane %v3342_v22, 5  ;;  %v3387_v29 = vshrl.u32 %v3955_v18, 16  ;;  %v3390_v38 = vshll.u32 %v3955_v18, 16 }
 0x2e2   : > { %4531 = vmatprep.mubr.bf16.mxu1 %v3065_v20  ;;  %v3283_v14 = vor.u32 %v3282_v8, %v5776_v59  ;;  %v5796_v25 = vrot.slane %v3348_v21, 5  ;;  %v3317_v27 = vrot.slane %v3315_v55, 4  ;;  %v3320_v33 = vrot.slane %v3318_v4, 5  ;;  %v3954_v4 = vld [vmem:[%s5031_s24 + $0x58] sm:$0x1] }
 0x2e3   : > { %4532 = vmatmul.mubr.bf16.vlgmr.msra.gmra.mrb[16].mxu1 %v3066_v43  ;;  %v5781_v36 = vrot.slane %v3297_v58, 4  ;;  %v3354_v6 = vrot.slane %v3352_v0, 4  ;;  %v5798_v57 = vrot.slane %v3324_v1, 5  ;;  %v3330_v61 = vrot.slane %v3328_v31, 4 }
 0x2e4   : > { %v3396_v35 = vshll.u32 %v3956_v32, 16  ;;  %v3400_v63 = vshrl.u32 %v3956_v32, 16  ;;  %v3312_v28 = vrot.slane %v3310_v2, 5  ;;  %v3286_v43 = vshll.u32 %v3942_v13, 16 }
 0x2e5   : > { %v3303_v47 = vsel %vm5791_vm13, %v5781_v36, %v5772_v54  ;;  %v3363_v30 = vshrl.u32 %v3952_v44, 16  ;;  %v3279_v20 = vsel %vm5791_vm13, %v5783_v9, %v5776_v59  ;;  %v3389_v42 = vrot.slane %v3387_v29, 4  ;;  %v3961_v9 = vld [vmem:[%s5031_s24 + $0x80] sm:$0xf] }
 0x2e6   : > { %v3392_v23 = vrot.slane %v3390_v38, 5  ;;  %v3366_v11 = vshll.u32 %v3952_v44, 16  ;;  %v3345_v39 = vor.u32 %v3344_v19, %v3341_v12  ;;  %v3321_v5 = vor.u32 %v3320_v33, %v3317_v27 }
 0x2e7   : > { %v3355_v26 = vor.u32 %v3354_v6, %v5796_v25  ;;  %v3358_v60 = vshll.u32 %v3951_v16, 16  ;;  %v3331_v51 = vor.u32 %v3330_v61, %v5798_v57  ;;  %v3334_v62 = vshll.u32 %v3948_v41, 16  ;;  %v3958_v6 = vld [vmem:[%s5031_s24 + $0x70] sm:$0xf] }
 0x2e8   : > { %v3398_v40 = vrot.slane %v3396_v35, 5  ;;  %v3402_v46 = vrot.slane %v3400_v63, 4  ;;  %v3308_v48 = vrot.slane %v3307_v3, 4  ;;  %v3284_v49 = vrot.slane %v3283_v14, 4 }
 0x2e9   : > { %v3288_v45 = vrot.slane %v3286_v43, 5  ;;  %v3365_v50 = vrot.slane %v3363_v30, 4  ;;  %v3393_v58 = vor.u32 %v3392_v23, %v3389_v42  ;;  %v3368_v54 = vrot.slane %v3366_v11, 5 }
 0x2ea   : > { %v3372_v7 = vshll.u32 %v3953_v17, 16  ;;  %v3376_v56 = vshrl.u32 %v3953_v17, 16  ;;  %v3346_v37 = vrot.slane %v3345_v39, 4  ;;  %v3322_v59 = vrot.slane %v3321_v5, 4 }
 0x2eb   : > { %v3356_v10 = vrot.slane %v3355_v26, 4  ;;  %v3360_v8 = vrot.slane %v3358_v60, 5  ;;  %v3332_v34 = vrot.slane %v3331_v51, 4  ;;  %v3336_v24 = vrot.slane %v3334_v62, 5 }
 0x2ec   : > { %v3403_v52 = vor.u32 %v3402_v46, %v3398_v40  ;;  %v3406_v22 = vshll.u32 %v3957_v53, 16  ;;  %v3476_v21 = vunpack.c.l.bf16 %v3303_v47  ;;  %v3313_v0 = vsel %vm5791_vm13, %v3308_v48, %v3312_v28 }
 0x2ed   : > { %v3289_v55 = vsel %vm5791_vm13, %v3284_v49, %v3288_v45  ;;  %v3394_v18 = vrot.slane %v3393_v58, 4  ;;  %v3369_v36 = vor.u32 %v3368_v54, %v3365_v50  ;;  %v5834_v1 = vrot.slane %v3372_v7, 5  ;;  %v3959_v54 = vld [vmem:[%s5031_s24 + $0x74] sm:$0xf] }
 0x2ee   : > { %v3378_v31 = vrot.slane %v3376_v56, 4  ;;  %v3474_v3 = vunpack.c.l.bf16 %v3279_v20  ;;  %v3351_v2 = vsel %vm5791_vm13, %v3346_v37, %v5796_v25  ;;  %v3327_v13 = vsel %vm5791_vm13, %v3322_v59, %v5798_v57  ;;  %v5853_v25 = vld [vmem:[%s5031_s24 + $0x84] sm:$0xf]  ;;  %v5859_v57 = vld [vmem:[%s5999_s7] ss:$0 sm:$0xff] }
 0x2ef   : > { %v3361_v14 = vsel %vm5791_vm13, %v3356_v10, %v3360_v8  ;;  %v3337_v32 = vsel %vm5791_vm13, %v3332_v34, %v3336_v24  ;;  %v3404_v12 = vrot.slane %v3403_v52, 4  ;;  %v3408_v19 = vrot.slane %v3406_v22, 5 }
 0x2f0   : > { %v3382_v29 = vshll.u32 %v3954_v4, 16  ;;  %v5850_v38 = vstv %s5819_s21  ;;  %v3477_v44 = vunpack.c.l.bf16 %v3313_v0  ;;  %v3475_v27 = vunpack.c.l.bf16 %v3289_v55 }
 0x2f1   : > { %v3435_v33 = vshrl.u32 %v3961_v9, 16  ;;  %v5861_v16 = vunpack.c.l.bf16 %v3351_v2  ;;  %v3399_v61 = vsel %vm5791_vm13, %v3394_v18, %v3398_v40  ;;  %v3370_v35 = vrot.slane %v3369_v36, 4 }
 0x2f2   : > { %v3379_v63 = vor.u32 %v3378_v31, %v5834_v1  ;;  %v5868_v47 = vunpack.c.l.bf16 %v3327_v13  ;;  %v5870_v28 = vunpack.c.l.bf16 %v3361_v14  ;;  %v5872_v43 = vunpack.c.l.bf16 %v3337_v32  ;;  %v3963_v14 = vld [vmem:[%s5031_s24 + $0x88] sm:$0x1]  ;;  %v3960_v32 = vld [vmem:[%s5031_s24 + $0x78] sm:$0x1] }
 0x2f3   : > { %v3438_v41 = vshll.u32 %v3961_v9, 16  ;;  %v3409_v20 = vsel %vm5791_vm13, %v3404_v12, %v3408_v19  ;;  %v5876_v42 = vrot.slane %v3382_v29, 5  ;;  %v3444_v23 = vshll.u32 %v5853_v25, 16 }
 0x2f4   : > { %v3411_v11 = vshrl.u32 %v3958_v6, 16  ;;  %v5880_v26 = vunpack.c.l.bf16 %v3399_v61  ;;  %v5882_v60 = vrot.slane %v3435_v33, 4  ;;  %v3414_v17 = vshll.u32 %v3958_v6, 16 }
 0x2f5   : > { %v3375_v40 = vsel %vm5791_vm13, %v3370_v35, %v5834_v1  ;;  %v5889_v46 = vrot.slane %v3379_v63, 4  ;;  %v3448_v48 = vshrl.u32 %v5853_v25, 16  ;;  %v5893_v53 = vunpack.c.l.bf16 %v3409_v20 }
 0x2f6   : > { %v3440_v58 = vrot.slane %v3438_v41, 5  ;;  %v5897_v37 = vrot.slane %v3444_v23, 5  ;;  %v5899_v59 = vrot.slane %v3411_v11, 4  ;;  %v5907_v34 = vrot.slane %v3414_v17, 5 }
 0x2f7   : > { %v3420_v22 = vshll.u32 %v3959_v54, 16  ;;  %v3424_v55 = vshrl.u32 %v3959_v54, 16  ;;  %v3482_v1 = vunpack.c.l.bf16 %v3375_v40  ;;  %v3385_v2 = vsel %vm5791_vm13, %v5889_v46, %v5876_v42 }
 0x2f8   : > { %v3441_v13 = vor.u32 %v3440_v58, %v5882_v60  ;;  %v3430_v20 = vshll.u32 %v3960_v32, 16  ;;  %v3483_v40 = vunpack.c.l.bf16 %v3385_v2 }
 0x2f9   : > { %v3422_v61 = vrot.slane %v3420_v22, 5  ;;  %v3426_v35 = vrot.slane %v3424_v55, 4 }
 0x2fa   : > { %v3442_v11 = vrot.slane %v3441_v13, 4 }
 0x2fb   : > { %v3427_v17 = vor.u32 %v3426_v35, %v3422_v61 }
 0x39e   : > { %v4521_v30 = vpop.f32.mrb[56].mxu0 }
 0x39f   : > { %v3181_v39 = vadd.f32 %v4521_v30, %v5859_v57  ;;  %v3172_v5 = vpop.f32.mrb[57].mxu0  ;;  %v3454_v30 = vshll.u32 %v3963_v14, 16 }
 0x3a0   : > { %v3173_v51 = vadd.f32 %v5859_v57, %v3172_v5  ;;  %v4522_v62 = vpop.f32.mrb[58].mxu0 }
 0x3a1   : > { %v3492_v49 = vadd.f32 %v3476_v21, %v3181_v39  ;;  %v3184_v45 = vadd.f32 %v4522_v62, %v5859_v57  ;;  %v3175_v50 = vpop.f32.mrb[59].mxu0 }
 0x3a2   : > { %v3490_v7 = vadd.f32 %v3474_v3, %v3173_v51  ;;  %v3176_v56 = vadd.f32 %v5859_v57, %v3175_v50 }
 0x3a3   : > { %vm3509_vm14 = vcmp.gt.f32.partialorder %v3492_v49, 0.0  ;;  %v3526_v10 = vmul.f32 %v5850_v38, %v3492_v49  ;;  %v3493_v8 = vadd.f32 %v3477_v44, %v3184_v45  ;;  %v3417_v44 = vor.u32 %v5907_v34, %v5899_v59 }
 0x3a4   : > { %vm3507_vm15 = vcmp.gt.f32.partialorder %v3490_v7, 0.0  ;;  %v3524_v24 = vmul.f32 %v5850_v38, %v3490_v7  ;;  %v3491_v52 = vadd.f32 %v3475_v27, %v3176_v56  ;;  %v3450_v27 = vrot.slane %v3448_v48, 4 }
 0x3a5   : > { %v3542_v21 = vsel %vm3509_vm14, %v3492_v49, %v3526_v10  ;;  %vm3510_vm0 = vcmp.gt.f32.partialorder %v3493_v8, 0.0  ;;  %v3527_v0 = vmul.f32 %v5850_v38, %v3493_v8  ;;  %v3447_v49 = vsel %vm5791_vm13, %v3442_v11, %v5897_v37 }
 0x3a6   : > { %3558 = vst [vmem:[%s5904_s28 + $0x10] sm:$0xff] %v3542_v21  ;;  %v3540_v4 = vsel %vm3507_vm15, %v3490_v7, %v3524_v24  ;;  %vm3508_vm2 = vcmp.gt.f32.partialorder %v3491_v52, 0.0  ;;  %v3525_v18 = vmul.f32 %v5850_v38, %v3491_v52  ;;  %v4525_v36 = vpop.f32.mrb[60].mxu0  ;;  %v3451_v5 = vor.u32 %v3450_v27, %v5897_v37 }
 0x3a7   : > { %3556 = vst [vmem:[%s5904_s28] sm:$0xff] %v3540_v4  ;;  %v3543_v31 = vsel %vm3510_vm0, %v3493_v8, %v3527_v0  ;;  %v3197_v9 = vadd.f32 %v4525_v36, %v5859_v57  ;;  %v3188_v3 = vpop.f32.mrb[61].mxu0  ;;  %v3418_v45 = vrot.slane %v3417_v44, 4  ;;  %v3456_v56 = vrot.slane %v3454_v30, 5 }
 0x3a8   : > { %3559 = vst [vmem:[%s5904_s28 + $0x18] sm:$0xff] %v3543_v31  ;;  %v3541_v12 = vsel %vm3508_vm2, %v3491_v52, %v3525_v18  ;;  %v3189_v19 = vadd.f32 %v5859_v57, %v3188_v3  ;;  %v4526_v29 = vpop.f32.mrb[62].mxu0  ;;  %v3452_v7 = vrot.slane %v3451_v5, 4  ;;  %v3428_v34 = vrot.slane %v3427_v17, 4 }
 0x3a9   : > { %3557 = vst [vmem:[%s5904_s28 + $0x8] sm:$0xff] %v3541_v12  ;;  %v3496_v25 = vadd.f32 %v5861_v16, %v3197_v9  ;;  %v3200_v33 = vadd.f32 %v4526_v29, %v5859_v57  ;;  %v3191_v6 = vpop.f32.mrb[63].mxu0  ;;  %v3432_v24 = vrot.slane %v3430_v20, 5  ;;  %v3488_v22 = vunpack.c.l.bf16 %v3447_v49 }
 0x3aa   : > { %v3494_v63 = vadd.f32 %v5868_v47, %v3189_v19  ;;  %v3192_v41 = vadd.f32 %v5859_v57, %v3191_v6  ;;  %v3423_v55 = vsel %vm5791_vm13, %v3418_v45, %v3422_v61  ;;  %v3457_v18 = vsel %vm5791_vm13, %v3452_v7, %v3456_v56 }
 0x3ab   : > { %vm3513_vm3 = vcmp.gt.f32.partialorder %v3496_v25, 0.0  ;;  %v3530_v42 = vmul.f32 %v5850_v38, %v3496_v25  ;;  %v3497_v23 = vadd.f32 %v5870_v28, %v3200_v33  ;;  %v3433_v31 = vsel %vm5791_vm13, %v3428_v34, %v3432_v24 }
 0x3ac   : > { %vm3511_vm4 = vcmp.gt.f32.partialorder %v3494_v63, 0.0  ;;  %v3528_v16 = vmul.f32 %v5850_v38, %v3494_v63  ;;  %v3495_v39 = vadd.f32 %v5872_v43, %v3192_v41  ;;  %v3486_v2 = vunpack.c.l.bf16 %v3423_v55 }
 0x3ad   : > { %v3546_v47 = vsel %vm3513_vm3, %v3496_v25, %v3530_v42  ;;  %vm3514_vm5 = vcmp.gt.f32.partialorder %v3497_v23, 0.0  ;;  %v3531_v60 = vmul.f32 %v5850_v38, %v3497_v23  ;;  %v3489_v12 = vunpack.c.l.bf16 %v3457_v18 }
 0x3ae   : > { %3562 = vst [vmem:[%s5904_s28 + $0x30] sm:$0xff] %v3546_v47  ;;  %v3544_v51 = vsel %vm3511_vm4, %v3494_v63, %v3528_v16  ;;  %vm3512_vm6 = vcmp.gt.f32.partialorder %v3495_v39, 0.0  ;;  %v3529_v28 = vmul.f32 %v5850_v38, %v3495_v39  ;;  %v4529_v62 = vpop.f32.mrb[64].mxu0  ;;  %v3487_v44 = vunpack.c.l.bf16 %v3433_v31 }
 0x3af   : > { %3560 = vst [vmem:[%s5904_s28 + $0x20] sm:$0xff] %v3544_v51  ;;  %v3547_v46 = vsel %vm3514_vm5, %v3497_v23, %v3531_v60  ;;  %v3213_v43 = vadd.f32 %v4529_v62, %v5859_v57  ;;  %v3204_v48 = vpop.f32.mrb[65].mxu0 }
 0x3b0   : > { %3563 = vst [vmem:[%s5904_s28 + $0x38] sm:$0xff] %v3547_v46  ;;  %v3545_v50 = vsel %vm3512_vm6, %v3495_v39, %v3529_v28  ;;  %v3205_v58 = vadd.f32 %v5859_v57, %v3204_v48  ;;  %v4530_v54 = vpop.f32.mrb[66].mxu0 }
 0x3b1   : > { %3561 = vst [vmem:[%s5904_s28 + $0x28] sm:$0xff] %v3545_v50  ;;  %v3500_v59 = vadd.f32 %v5880_v26, %v3213_v43  ;;  %v3216_v10 = vadd.f32 %v4530_v54, %v5859_v57  ;;  %v3207_v8 = vpop.f32.mrb[67].mxu0 }
 0x3b2   : > { %v3498_v52 = vadd.f32 %v3482_v1, %v3205_v58  ;;  %v3208_v37 = vadd.f32 %v5859_v57, %v3207_v8 }
 0x3b3   : > { %vm3517_vm7 = vcmp.gt.f32.partialorder %v3500_v59, 0.0  ;;  %v3534_v21 = vmul.f32 %v5850_v38, %v3500_v59  ;;  %v3501_v0 = vadd.f32 %v5893_v53, %v3216_v10 }
 0x3b4   : > { %vm3515_vm9 = vcmp.gt.f32.partialorder %v3498_v52, 0.0  ;;  %v3532_v26 = vmul.f32 %v5850_v38, %v3498_v52  ;;  %v3499_v4 = vadd.f32 %v3483_v40, %v3208_v37 }
 0x3b5   : > { %v3550_v36 = vsel %vm3517_vm7, %v3500_v59, %v3534_v21  ;;  %vm3518_vm10 = vcmp.gt.f32.partialorder %v3501_v0, 0.0  ;;  %v3535_v1 = vmul.f32 %v5850_v38, %v3501_v0 }
 0x3b6   : > { %3566 = vst [vmem:[%s5904_s28 + $0x50] sm:$0xff] %v3550_v36  ;;  %v3548_v53 = vsel %vm3515_vm9, %v3498_v52, %v3532_v26  ;;  %vm3516_vm11 = vcmp.gt.f32.partialorder %v3499_v4, 0.0  ;;  %v3533_v9 = vmul.f32 %v5850_v38, %v3499_v4  ;;  %v4533_v3 = vpop.f32.mrb[16].mxu1 }
 0x3b7   : > { %3564 = vst [vmem:[%s5904_s28 + $0x40] sm:$0xff] %v3548_v53  ;;  %v3551_v13 = vsel %vm3518_vm10, %v3501_v0, %v3535_v1  ;;  %v3229_v14 = vadd.f32 %v4533_v3, %v5859_v57  ;;  %v3220_v32 = vpop.f32.mrb[17].mxu1 }
 0x3b8   : > { %3567 = vst [vmem:[%s5904_s28 + $0x58] sm:$0xff] %v3551_v13  ;;  %v3549_v19 = vsel %vm3516_vm11, %v3499_v4, %v3533_v9  ;;  %v3221_v29 = vadd.f32 %v5859_v57, %v3220_v32  ;;  %v4534_v15 = vpop.f32.mrb[18].mxu1 }
 0x3b9   : > { %3565 = vst [vmem:[%s5904_s28 + $0x48] sm:$0xff] %v3549_v19  ;;  %v3504_v27 = vadd.f32 %v3488_v22, %v3229_v14  ;;  %v3232_v25 = vadd.f32 %v4534_v15, %v5859_v57  ;;  %v3223_v33 = vpop.f32.mrb[19].mxu1 }
 0x3ba   : > { %v3502_v6 = vadd.f32 %v3486_v2, %v3221_v29  ;;  %v3224_v61 = vadd.f32 %v5859_v57, %v3223_v33 }
 0x3bb   : > { %vm3521_vm12 = vcmp.gt.f32.partialorder %v3504_v27, 0.0  ;;  %v3538_v35 = vmul.f32 %v5850_v38, %v3504_v27  ;;  %v3505_v63 = vadd.f32 %v3489_v12, %v3232_v25 }
 0x3bc   : > { %vm3519_vm8 = vcmp.gt.f32.partialorder %v3502_v6, 0.0  ;;  %v3536_v41 = vmul.f32 %v5850_v38, %v3502_v6  ;;  %v3503_v30 = vadd.f32 %v3487_v44, %v3224_v61 }
 0x3bd   : > { %v3554_v20 = vsel %vm3521_vm12, %v3504_v27, %v3538_v35  ;;  %vm3522_vm1 = vcmp.gt.f32.partialorder %v3505_v63, 0.0  ;;  %v3539_v42 = vmul.f32 %v5850_v38, %v3505_v63 }
 0x3be   : > { %3570 = vst [vmem:[%s5904_s28 + $0x70] sm:$0xff] %v3554_v20  ;;  %v3552_v23 = vsel %vm3519_vm8, %v3502_v6, %v3536_v41  ;;  %vm3520_vm13 = vcmp.gt.f32.partialorder %v3503_v30, 0.0  ;;  %v3537_v11 = vmul.f32 %v5850_v38, %v3503_v30 }
 0x3bf   : > { %3568 = vst [vmem:[%s5904_s28 + $0x60] sm:$0xff] %v3552_v23  ;;  %v3555_v57 = vsel %vm3522_vm1, %v3505_v63, %v3539_v42 }
 0x3c0   : > { %3571 = vst [vmem:[%s5904_s28 + $0x78] sm:$0xff] %v3555_v57  ;;  %v3553_v16 = vsel %vm3520_vm13, %v3503_v30, %v3537_v11 }
 0x3c1   : > { %3569 = vst [vmem:[%s5904_s28 + $0x68] sm:$0xff] %v3553_v16 }
 0x3c2 PF: > { %s20_s13 = sadd.s32 1, %s4899_s13   ;;  %s6007_s30 = smov %s4891_s11 }
 0x3c3   : > { %p17_p4 = scmp.ge.s32.totalorder %s20_s13, 6   ;;  %s6008_s10 = smov %s4895_s12 }
 0x3c4   : > { %s6009_s11 = smov %s6012_s15  ;;  %s6010_s12 = smov %s6016_s16 }
 0x3c5   :  { %19 = sbr.rel (!%p17_p4) target bundleno = 3 (0x3), region = 102 }
 0x3cc   :  { %3604 = vsyncpa [#allocation3], 1 }
 0x3cd   :  { %3606 = vsyncpa [#allocation3 + $0x1], 1 }

</bundles_post_ra>
